<compile_context>
chip_gen: v6e
topology: v6e:2x2x1
jax: 0.10.0
libtpu: 0.0.40
codegen_flags: <defaults>
</compile_context>

<pallas_src>
import jax
import jax.numpy as jnp
from jax.experimental import pallas as pl
from jax.experimental.pallas import tpu as pltpu


# ----------------------------------------------------------------------------
# Host-side linear operators on the flattened pixel axis (all tiny f32
# matrices; everything spatial in this module is linear per channel).
# ----------------------------------------------------------------------------
def _axis_resize_matrix(out_size, in_size):
    """(out_size, in_size) align_corners=True bilinear resize matrix."""
    if out_size == in_size:
        return jnp.eye(out_size, dtype=jnp.float32)
    if in_size == 1:
        return jnp.ones((out_size, 1), jnp.float32)
    if out_size == 1:                        # align_corners=True -> coord 0
        return jnp.zeros((1, in_size), jnp.float32).at[0, 0].set(1.0)
    coords = jnp.arange(out_size, dtype=jnp.float32) * (
        (in_size - 1) / (out_size - 1))
    lo = jnp.clip(jnp.floor(coords).astype(jnp.int32), 0, in_size - 2)
    frac = coords - lo.astype(jnp.float32)
    m = jnp.zeros((out_size, in_size), jnp.float32)
    m = m.at[jnp.arange(out_size), lo].add(1.0 - frac)
    m = m.at[jnp.arange(out_size), lo + 1].add(frac)
    return m


def _resize_flat(in_hw, out_hw):
    """(ih*iw, oh*ow): y_flat = x_flat @ M is the separable align_corners
    bilinear resize of an (ih, iw) image to (oh, ow)."""
    ih, iw = in_hw
    oh, ow = out_hw
    if (ih, iw) == (oh, ow):
        return jnp.eye(ih * iw, dtype=jnp.float32)
    rh = _axis_resize_matrix(oh, ih)                    # (oh, ih)
    rw = _axis_resize_matrix(ow, iw)                    # (ow, iw)
    m = jnp.einsum('ih,jw->hwij', rh, rw)               # [h,w,i,j]
    return m.reshape(ih * iw, oh * ow)


def _pad_flat(h, w):
    """(h*w, (h+2)*(w+2)): put pixel (r,c) at padded column (r+1)*(w+2)+(c+1)
    (== Conv2d padding=1); all border columns are exact zeros."""
    r, c = jnp.meshgrid(jnp.arange(h), jnp.arange(w), indexing='ij')
    src = (r * w + c).reshape(-1)
    dst = ((r + 1) * (w + 2) + (c + 1)).reshape(-1)
    m = jnp.zeros((h * w, (h + 2) * (w + 2)), jnp.float32)
    return m.at[src, dst].set(1.0)


def _extract_flat(h, w):
    """(h*(w+2)-2, h*w): map the conv-output flat layout (column r*(w+2)+c,
    with 2 junk columns per row) back to dense pixels.  Junk rows are zero,
    so the (finite) garbage in junk columns never propagates."""
    r, c = jnp.meshgrid(jnp.arange(h), jnp.arange(w), indexing='ij')
    src = (r * (w + 2) + c).reshape(-1)
    dst = (r * w + c).reshape(-1)
    m = jnp.zeros((h * (w + 2) - 2, h * w), jnp.float32)
    return m.at[src, dst].set(1.0)


def _chain(*ms):
    out = ms[0]
    for m in ms[1:]:
        out = out @ m
    return out


def _stage_hw(H, W, n_scales, ind):
    if ind == n_scales - 1:
        return H, W
    s = 2 ** (n_scales - 1 - ind)
    return H // s, W // s


def _conv_hw(hs, ws, n_conv, j):
    if j == n_conv - 1:
        return hs, ws
    s = 2 ** (n_conv - 1 - j)
    return hs // s, ws // s


# ----------------------------------------------------------------------------
# Plan builder: static per-conv metadata + the constant operand arrays that
# are fed to the single pallas_call (after x).
# ----------------------------------------------------------------------------
def _build_plan_and_operands(x_shape, params):
    N, in_dim, H, W = (int(s) for s in x_shape)
    n_scales = len(params)
    n_conv = len(params[0])

    steps = []          # static Python metadata per conv step
    operands = []       # flat list of constant arrays (after x) for pallas_call
    step_index = {}     # (stage, conv) -> flat step index

    for ind in range(n_scales):
        hs, ws = _stage_hw(H, W, n_scales, ind)
        for j in range(n_conv):
            hc, wc = _conv_hw(hs, ws, n_conv, j)
            wpad = wc + 2
            p_cols = (hc + 2) * (wc + 2)        # padded flat width
            l_cols = hc * wpad - 2              # conv-output flat width

            w_hwio, b_vec = params[ind][j]      # (3,3,cin_total,cout), (cout,)
            cout = int(w_hwio.shape[3])
            cin_total = int(w_hwio.shape[2])

            pad_m = _pad_flat(hc, wc)
            stage_to_conv = _resize_flat((hs, ws), (hc, wc))

            # sources: (kind, producer_step, cin, transform). Channel order
            # matches torch.cat([scaled_ori_input, output]) at both levels.
            sources = [('x', -1, in_dim,
                        _chain(_resize_flat((H, W), (hs, ws)),
                               stage_to_conv, pad_m))]
            if ind > 0:      # previous stage output (module-level concat)
                ps = step_index[(ind - 1, n_conv - 1)]
                sp = steps[ps]
                sources.append(('step', ps, sp['cout'],
                                _chain(_extract_flat(sp['hc'], sp['wc']),
                                       _resize_flat((sp['hc'], sp['wc']),
                                                    (hs, ws)),
                                       stage_to_conv, pad_m)))
            if j > 0:        # previous conv output inside this B2SConv
                pc = step_index[(ind, j - 1)]
                sp = steps[pc]
                sources.append(('step', pc, sp['cout'],
                                _chain(_extract_flat(sp['hc'], sp['wc']),
                                       _resize_flat((sp['hc'], sp['wc']),
                                                    (hc, wc)),
                                       pad_m)))

            assert sum(s[2] for s in sources) == cin_total, (ind, j)

            # Single lane-dense conv LHS; column order == slab row order:
            # (source-major, tap (kh,kw), channel).
            w_cols, c_off = [], 0
            for (_, _, cin, _) in sources:
                w_src = w_hwio[:, :, c_off:c_off + cin, :]        # (3,3,cin,cout)
                w_cols.append(jnp.transpose(w_src, (3, 0, 1, 2))
                              .reshape(cout, 9 * cin))
                c_off += cin
            operands.append(jnp.concatenate(w_cols, axis=1).astype(jnp.float32))
            operands.append(b_vec.reshape(cout, 1).astype(jnp.float32))
            for (_, _, _, t) in sources:
                operands.append(t.astype(jnp.float32))

            steps.append(dict(
                hc=hc, wc=wc, p_cols=p_cols, l_cols=l_cols, cout=cout,
                offs=tuple(kh * wpad + kw for kh in range(3) for kw in range(3)),
                sources=tuple((kind, prod, cin)
                              for (kind, prod, cin, _) in sources)))
            step_index[(ind, j)] = len(steps) - 1

    # Final junk-column drop -> dense (H*W) lanes, applied in-kernel.
    last = steps[-1]
    operands.append(_extract_flat(last['hc'], last['wc']))
    return steps, operands


# ----------------------------------------------------------------------------
# Fused kernel: the whole B2SConvModule forward for one image per grid step.
# ----------------------------------------------------------------------------
def _make_fused_kernel(steps):
    def kernel(*refs):
        # Ref order mirrors the wrapper: x, then per conv step
        # [w_flat, bias, T_src...], then E_final, output, then slab scratches.
        it = iter(refs)
        x_ref = next(it)
        per_step = []
        for st in steps:
            w_ref = next(it)
            b_ref = next(it)
            t_refs = tuple(next(it) for _ in st['sources'])
            per_step.append((w_ref, b_ref, t_refs))
        efin_ref = next(it)
        o_ref = next(it)
        slabs = tuple(next(it) for _ in steps)

        x = x_ref[0]                                     # (in_dim, H*W) f32
        outs = []
        for st, (w_ref, b_ref, t_refs), slab in zip(steps, per_step, slabs):
            l = st['l_cols']
            row = 0
            for (kind, prod, cin), t_ref in zip(st['sources'], t_refs):
                src = x if kind == 'x' else outs[prod]
                # resize (+resize) + re-pad (+junk drop) fused into ONE dot.
                padded = jnp.dot(src, t_ref[...],
                                 preferred_element_type=jnp.float32)  # (cin, P)
                # Hoisted im2col: 9 lane-shifted copies written ONCE into the
                # slab scratch (channel concat fused into the same slab).
                for off in st['offs']:
                    slab[row:row + cin, :] = padded[:, off:off + l]
                    row += cin
            # ONE MXU dot per conv: (cout, 9*cin_tot) @ (9*cin_tot, l).
            acc = jnp.dot(w_ref[...], slab[...],
                          preferred_element_type=jnp.float32)
            acc = acc + b_ref[...]                        # (cout, 1) broadcast
            acc = jnp.where(acc >= 0.0, acc, 0.2 * acc)   # LeakyReLU(0.2)
            outs.append(acc)

        # Drop junk columns -> lane-dense (cout, H*W) output (one dot).
        o_ref[0] = jnp.dot(outs[-1], efin_ref[...],
                           preferred_element_type=jnp.float32
                           ).astype(o_ref.dtype)
    return kernel


def b2s_conv_module_pallas(x, params):
    """Fused B2SConvModule forward.  x: (N, C, H, W) f32 (NCHW)."""
    N, in_dim, H, W = (int(s) for s in x.shape)
    hw = H * W
    steps, operands = _build_plan_and_operands(x.shape, params)
    out_dim = steps[-1]['cout']

    x_flat = x.reshape(N, in_dim, hw)                    # free row-major reshape

    in_specs = [pl.BlockSpec((1, in_dim, hw), lambda n: (n, 0, 0))]
    for op in operands:
        in_specs.append(pl.BlockSpec(tuple(int(d) for d in op.shape),
                                     lambda n: (0, 0)))

    scratch_shapes = [
        pltpu.VMEM((9 * sum(c for _, _, c in st['sources']), st['l_cols']),
                   jnp.float32)
        for st in steps
    ]

    flops = 0
    for st in steps:
        cin_tot = sum(c for _, _, c in st['sources'])
        for (kind, prod, cin) in st['sources']:
            k_src = hw if kind == 'x' else steps[prod]['l_cols']
            flops += 2 * cin * k_src * st['p_cols']
        flops += 2 * st['cout'] * 9 * cin_tot * st['l_cols']
    flops += 2 * out_dim * steps[-1]['l_cols'] * hw
    flops *= N
    bytes_accessed = (N * in_dim * hw * 4
                      + sum(int(op.size) * 4 for op in operands)
                      + N * out_dim * hw * 4)

    out = pl.pallas_call(
        _make_fused_kernel(steps),
        out_shape=jax.ShapeDtypeStruct((N, out_dim, hw), jnp.float32),
        grid_spec=pltpu.PrefetchScalarGridSpec(
            num_scalar_prefetch=0,
            grid=(N,),                      # one image per step; "parallel"
            in_specs=in_specs,              # keeps both v7x TCs busy.
            out_specs=pl.BlockSpec((1, out_dim, hw), lambda n: (n, 0, 0)),
            scratch_shapes=scratch_shapes),
        compiler_params=pltpu.CompilerParams(
            dimension_semantics=("parallel",),
            vmem_limit_bytes=32 * 1024 * 1024),
        cost_estimate=pl.CostEstimate(flops=int(flops), transcendentals=0,
                                      bytes_accessed=int(bytes_accessed)),
    )(x_flat, *operands)

    return out.reshape(N, out_dim, H, W)


# ----------------------------------------------------------------------------
# Deterministic synthetic parameter init (no checkpoint load).
# ----------------------------------------------------------------------------
def init_params(key, in_dim, med_dim, out_dim, n_scales, n_conv=1):
    params = []
    for ind in range(n_scales):
        s_in = in_dim if ind == 0 else in_dim + med_dim
        s_out = out_dim if ind == n_scales - 1 else med_dim
        layer = []
        for j in range(n_conv):
            c_in = s_in if j == 0 else s_in + med_dim
            c_out = s_out if j == n_conv - 1 else med_dim
            key, kw, kb = jax.random.split(key, 3)
            w = jax.random.normal(kw, (3, 3, c_in, c_out), jnp.float32) * 0.1
            b = jax.random.normal(kb, (c_out,), jnp.float32) * 0.1
            layer.append((w, b))
        params.append(layer)
    return params


# ----------------------------------------------------------------------------
# Pure-JAX f32 reference (lax.conv + sequential separable resizes).
# ----------------------------------------------------------------------------
def bilinear_resize_ac(x, out_h, out_w):
    _, _, h, w = x.shape
    if out_h == h and out_w == w:
        return x
    y = jnp.matmul(x, _axis_resize_matrix(out_w, w).T)   # (N,C,h,out_w)
    y = jnp.matmul(_axis_resize_matrix(out_h, h), y)     # (N,C,out_h,out_w)
    return y


def _conv_ref(xs, p):
    w, b = p
    x = jnp.concatenate(xs, axis=1)
    out = jax.lax.conv_general_dilated(
        x, w, window_strides=(1, 1), padding='SAME',
        dimension_numbers=('NCHW', 'HWIO', 'NCHW'))
    out = out + b.reshape(1, -1, 1, 1)
    return jnp.where(out >= 0.0, out, 0.2 * out)


def _b2s_loop(xs, stage_params, stage_fn):
    n = len(stage_params)
    H, W = xs[0].shape[2], xs[0].shape[3]
    output = None
    for i in range(n):
        if i != n - 1:
            scale = 2 ** (n - 1 - i)
            scaled = [bilinear_resize_ac(t, H // scale, W // scale) for t in xs]
        else:
            scaled = list(xs)
        inp = scaled if i == 0 else scaled + [output]
        output = stage_fn(inp, stage_params[i])
        if i != n - 1:
            output = bilinear_resize_ac(output, output.shape[2] * 2,
                                        output.shape[3] * 2)
    return output


def b2s_conv_module_ref(x_nchw, params):
    return _b2s_loop([x_nchw], params,
                     lambda inp, layer: _b2s_loop(inp, layer, _conv_ref))


if __name__ == "__main__":
    B, in_dim, med_dim, out_dim = 2, 4, 8, 6
    H = W = 16
    n_scales, n_conv = 3, 1

    key = jax.random.PRNGKey(0)
    key, kx = jax.random.split(key)
    x = jax.random.normal(kx, (B, in_dim, H, W), jnp.float32)   # NCHW input
    params = init_params(key, in_dim, med_dim, out_dim, n_scales, n_conv)

    fwd = jax.jit(b2s_conv_module_pallas)
    out = jax.block_until_ready(fwd(x, params))
    assert out.shape == (B, out_dim, H, W), out.shape
    assert out.dtype == jnp.float32

    ref = jax.block_until_ready(b2s_conv_module_ref(x, params))
    max_err = float(jnp.max(jnp.abs(out - ref)))
    assert jnp.allclose(out, ref, rtol=5e-2, atol=5e-2), max_err
    assert float(jnp.mean(jnp.abs(out - ref))) < 2e-2

    print("KERNEL_OK")
</pallas_src>

<mosaic_0001>
module attributes {stable_mosaic.version = 11 : i64} {
  func.func private @main(%arg0: i32) attributes {dimension_semantics = [#tpu.dimension_semantics<core_parallel>], iteration_bounds = array<i64: 2>, tpu.core_type = #tpu.core_type<sc_scalar_subcore>, window_params = []} {
    return
  }
}

module attributes {stable_mosaic.version = 11 : i64} {
  func.func private @main(%arg0: i32) attributes {dimension_semantics = [#tpu.dimension_semantics<core_parallel>], iteration_bounds = array<i64: 2>, tpu.core_type = #tpu.core_type<sc_scalar_subcore>, window_params = []} {
    return
  }
}

module attributes {stable_mosaic.version = 11 : i64} {
  func.func @kernel(%arg0: i32, %arg1: memref<1x4x256xf32, #tpu.memory_space<vmem>>, %arg2: memref<8x36xf32, #tpu.memory_space<vmem>>, %arg3: memref<8x1xf32, #tpu.memory_space<vmem>>, %arg4: memref<256x36xf32, #tpu.memory_space<vmem>>, %arg5: memref<8x108xf32, #tpu.memory_space<vmem>>, %arg6: memref<8x1xf32, #tpu.memory_space<vmem>>, %arg7: memref<256x100xf32, #tpu.memory_space<vmem>>, %arg8: memref<22x100xf32, #tpu.memory_space<vmem>>, %arg9: memref<6x108xf32, #tpu.memory_space<vmem>>, %arg10: memref<6x1xf32, #tpu.memory_space<vmem>>, %arg11: memref<256x324xf32, #tpu.memory_space<vmem>>, %arg12: memref<78x324xf32, #tpu.memory_space<vmem>>, %arg13: memref<286x256xf32, #tpu.memory_space<vmem>>, %arg14: memref<1x6x256xf32, #tpu.memory_space<vmem>>, %arg15: memref<36x22xf32, #tpu.memory_space<vmem>>, %arg16: memref<108x78xf32, #tpu.memory_space<vmem>>, %arg17: memref<108x286xf32, #tpu.memory_space<vmem>>) attributes {dimension_semantics = [#tpu.dimension_semantics<parallel>], iteration_bounds = array<i64: 2>, scalar_prefetch = 0 : i64, scratch_operands = 3 : i64, tpu.core_type = #tpu.core_type<tc>, window_params = [{transform_indices = @transform_0, window_bounds = array<i64: 1, 4, 256>}, {pipeline_mode = #tpu.pipeline_mode<synchronous>, transform_indices = @transform_1, window_bounds = array<i64: 8, 36>}, {pipeline_mode = #tpu.pipeline_mode<synchronous>, transform_indices = @transform_2, window_bounds = array<i64: 8, 1>}, {pipeline_mode = #tpu.pipeline_mode<synchronous>, transform_indices = @transform_3, window_bounds = array<i64: 256, 36>}, {pipeline_mode = #tpu.pipeline_mode<synchronous>, transform_indices = @transform_4, window_bounds = array<i64: 8, 108>}, {pipeline_mode = #tpu.pipeline_mode<synchronous>, transform_indices = @transform_5, window_bounds = array<i64: 8, 1>}, {pipeline_mode = #tpu.pipeline_mode<synchronous>, transform_indices = @transform_6, window_bounds = array<i64: 256, 100>}, {pipeline_mode = #tpu.pipeline_mode<synchronous>, transform_indices = @transform_7, window_bounds = array<i64: 22, 100>}, {pipeline_mode = #tpu.pipeline_mode<synchronous>, transform_indices = @transform_8, window_bounds = array<i64: 6, 108>}, {pipeline_mode = #tpu.pipeline_mode<synchronous>, transform_indices = @transform_9, window_bounds = array<i64: 6, 1>}, {pipeline_mode = #tpu.pipeline_mode<synchronous>, transform_indices = @transform_10, window_bounds = array<i64: 256, 324>}, {pipeline_mode = #tpu.pipeline_mode<synchronous>, transform_indices = @transform_11, window_bounds = array<i64: 78, 324>}, {pipeline_mode = #tpu.pipeline_mode<synchronous>, transform_indices = @transform_12, window_bounds = array<i64: 286, 256>}, {transform_indices = @transform_13, window_bounds = array<i64: 1, 6, 256>}]} {
    %c0 = arith.constant 0 : index
    %c0_0 = arith.constant 0 : index
    %c0_1 = arith.constant 0 : index
    %0 = vector.load %arg1[%c0, %c0_0, %c0_1] : memref<1x4x256xf32, #tpu.memory_space<vmem>>, vector<1x4x256xf32>
    %1 = vector.shape_cast %0 : vector<1x4x256xf32> to vector<4x256xf32>
    %c0_2 = arith.constant 0 : index
    %c0_3 = arith.constant 0 : index
    %2 = vector.load %arg4[%c0_2, %c0_3] : memref<256x36xf32, #tpu.memory_space<vmem>>, vector<256x36xf32>
    %cst = arith.constant dense<0.000000e+00> : vector<4x36xf32>
    %3 = tpu.matmul %1, %2, %cst {dimension_numbers = #tpu.dot_dimension_numbers<[1], [0], [0], [1], [0, 0, 1, 1], [], []>} : vector<4x256xf32>, vector<256x36xf32>, vector<4x36xf32> -> vector<4x36xf32>
    %4 = vector.extract_strided_slice %3 {offsets = [0, 0], sizes = [4, 22], strides = [1, 1]} : vector<4x36xf32> to vector<4x22xf32>
    %c0_4 = arith.constant 0 : index
    %c0_5 = arith.constant 0 : index
    %5 = vector.load %arg15[%c0_4, %c0_5] : memref<36x22xf32, #tpu.memory_space<vmem>>, vector<4x22xf32>
    tpu.vector_store %arg15[%c0_4, %c0_5], %4 {strides = array<i32>} : memref<36x22xf32, #tpu.memory_space<vmem>>, vector<4x22xf32>,
    %6 = vector.extract_strided_slice %3 {offsets = [0, 1], sizes = [4, 22], strides = [1, 1]} : vector<4x36xf32> to vector<4x22xf32>
    %c4 = arith.constant 4 : index
    %c0_6 = arith.constant 0 : index
    %7 = vector.load %arg15[%c4, %c0_6] : memref<36x22xf32, #tpu.memory_space<vmem>>, vector<4x22xf32>
    tpu.vector_store %arg15[%c4, %c0_6], %6 {strides = array<i32>} : memref<36x22xf32, #tpu.memory_space<vmem>>, vector<4x22xf32>,
    %8 = vector.extract_strided_slice %3 {offsets = [0, 2], sizes = [4, 22], strides = [1, 1]} : vector<4x36xf32> to vector<4x22xf32>
    %c8 = arith.constant 8 : index
    %c0_7 = arith.constant 0 : index
    %9 = vector.load %arg15[%c8, %c0_7] : memref<36x22xf32, #tpu.memory_space<vmem>>, vector<4x22xf32>
    tpu.vector_store %arg15[%c8, %c0_7], %8 {strides = array<i32>} : memref<36x22xf32, #tpu.memory_space<vmem>>, vector<4x22xf32>,
    %10 = vector.extract_strided_slice %3 {offsets = [0, 6], sizes = [4, 22], strides = [1, 1]} : vector<4x36xf32> to vector<4x22xf32>
    %c12 = arith.constant 12 : index
    %c0_8 = arith.constant 0 : index
    %11 = vector.load %arg15[%c12, %c0_8] : memref<36x22xf32, #tpu.memory_space<vmem>>, vector<4x22xf32>
    tpu.vector_store %arg15[%c12, %c0_8], %10 {strides = array<i32>} : memref<36x22xf32, #tpu.memory_space<vmem>>, vector<4x22xf32>,
    %12 = vector.extract_strided_slice %3 {offsets = [0, 7], sizes = [4, 22], strides = [1, 1]} : vector<4x36xf32> to vector<4x22xf32>
    %c16 = arith.constant 16 : index
    %c0_9 = arith.constant 0 : index
    %13 = vector.load %arg15[%c16, %c0_9] : memref<36x22xf32, #tpu.memory_space<vmem>>, vector<4x22xf32>
    tpu.vector_store %arg15[%c16, %c0_9], %12 {strides = array<i32>} : memref<36x22xf32, #tpu.memory_space<vmem>>, vector<4x22xf32>,
    %14 = vector.extract_strided_slice %3 {offsets = [0, 8], sizes = [4, 22], strides = [1, 1]} : vector<4x36xf32> to vector<4x22xf32>
    %c20 = arith.constant 20 : index
    %c0_10 = arith.constant 0 : index
    %15 = vector.load %arg15[%c20, %c0_10] : memref<36x22xf32, #tpu.memory_space<vmem>>, vector<4x22xf32>
    tpu.vector_store %arg15[%c20, %c0_10], %14 {strides = array<i32>} : memref<36x22xf32, #tpu.memory_space<vmem>>, vector<4x22xf32>,
    %16 = vector.extract_strided_slice %3 {offsets = [0, 12], sizes = [4, 22], strides = [1, 1]} : vector<4x36xf32> to vector<4x22xf32>
    %c24 = arith.constant 24 : index
    %c0_11 = arith.constant 0 : index
    %17 = vector.load %arg15[%c24, %c0_11] : memref<36x22xf32, #tpu.memory_space<vmem>>, vector<4x22xf32>
    tpu.vector_store %arg15[%c24, %c0_11], %16 {strides = array<i32>} : memref<36x22xf32, #tpu.memory_space<vmem>>, vector<4x22xf32>,
    %18 = vector.extract_strided_slice %3 {offsets = [0, 13], sizes = [4, 22], strides = [1, 1]} : vector<4x36xf32> to vector<4x22xf32>
    %c28 = arith.constant 28 : index
    %c0_12 = arith.constant 0 : index
    %19 = vector.load %arg15[%c28, %c0_12] : memref<36x22xf32, #tpu.memory_space<vmem>>, vector<4x22xf32>
    tpu.vector_store %arg15[%c28, %c0_12], %18 {strides = array<i32>} : memref<36x22xf32, #tpu.memory_space<vmem>>, vector<4x22xf32>,
    %20 = vector.extract_strided_slice %3 {offsets = [0, 14], sizes = [4, 22], strides = [1, 1]} : vector<4x36xf32> to vector<4x22xf32>
    %c32 = arith.constant 32 : index
    %c0_13 = arith.constant 0 : index
    %21 = vector.load %arg15[%c32, %c0_13] : memref<36x22xf32, #tpu.memory_space<vmem>>, vector<4x22xf32>
    tpu.vector_store %arg15[%c32, %c0_13], %20 {strides = array<i32>} : memref<36x22xf32, #tpu.memory_space<vmem>>, vector<4x22xf32>,
    %c0_14 = arith.constant 0 : index
    %c0_15 = arith.constant 0 : index
    %22 = vector.load %arg2[%c0_14, %c0_15] : memref<8x36xf32, #tpu.memory_space<vmem>>, vector<8x36xf32>
    %c0_16 = arith.constant 0 : index
    %c0_17 = arith.constant 0 : index
    %23 = vector.load %arg15[%c0_16, %c0_17] : memref<36x22xf32, #tpu.memory_space<vmem>>, vector<36x22xf32>
    %cst_18 = arith.constant dense<0.000000e+00> : vector<8x22xf32>
    %24 = tpu.matmul %22, %23, %cst_18 {dimension_numbers = #tpu.dot_dimension_numbers<[1], [0], [0], [1], [0, 0, 1, 1], [], []>} : vector<8x36xf32>, vector<36x22xf32>, vector<8x22xf32> -> vector<8x22xf32>
    %c0_19 = arith.constant 0 : index
    %c0_20 = arith.constant 0 : index
    %25 = vector.load %arg3[%c0_19, %c0_20] : memref<8x1xf32, #tpu.memory_space<vmem>>, vector<8x1xf32>
    %26 = vector.broadcast %25 : vector<8x1xf32> to vector<8x22xf32>
    %27 = arith.addf %24, %26 : vector<8x22xf32>
    %cst_21 = arith.constant 0.000000e+00 : f32
    %28 = vector.broadcast %cst_21 : f32 to vector<8x22xf32>
    %29 = arith.cmpf oge, %27, %28 : vector<8x22xf32>
    %cst_22 = arith.constant 2.000000e-01 : f32
    %30 = vector.broadcast %cst_22 : f32 to vector<8x22xf32>
    %31 = arith.mulf %30, %27 : vector<8x22xf32>
    %32 = arith.select %29, %27, %31 : vector<8x22xi1>, vector<8x22xf32>
    %c0_23 = arith.constant 0 : index
    %c0_24 = arith.constant 0 : index
    %33 = vector.load %arg7[%c0_23, %c0_24] : memref<256x100xf32, #tpu.memory_space<vmem>>, vector<256x100xf32>
    %cst_25 = arith.constant dense<0.000000e+00> : vector<4x100xf32>
    %34 = tpu.matmul %1, %33, %cst_25 {dimension_numbers = #tpu.dot_dimension_numbers<[1], [0], [0], [1], [0, 0, 1, 1], [], []>} : vector<4x256xf32>, vector<256x100xf32>, vector<4x100xf32> -> vector<4x100xf32>
    %35 = vector.extract_strided_slice %34 {offsets = [0, 0], sizes = [4, 78], strides = [1, 1]} : vector<4x100xf32> to vector<4x78xf32>
    %c0_26 = arith.constant 0 : index
    %c0_27 = arith.constant 0 : index
    %36 = vector.load %arg16[%c0_26, %c0_27] : memref<108x78xf32, #tpu.memory_space<vmem>>, vector<4x78xf32>
    tpu.vector_store %arg16[%c0_26, %c0_27], %35 {strides = array<i32>} : memref<108x78xf32, #tpu.memory_space<vmem>>, vector<4x78xf32>,
    %37 = vector.extract_strided_slice %34 {offsets = [0, 1], sizes = [4, 78], strides = [1, 1]} : vector<4x100xf32> to vector<4x78xf32>
    %c4_28 = arith.constant 4 : index
    %c0_29 = arith.constant 0 : index
    %38 = vector.load %arg16[%c4_28, %c0_29] : memref<108x78xf32, #tpu.memory_space<vmem>>, vector<4x78xf32>
    tpu.vector_store %arg16[%c4_28, %c0_29], %37 {strides = array<i32>} : memref<108x78xf32, #tpu.memory_space<vmem>>, vector<4x78xf32>,
    %39 = vector.extract_strided_slice %34 {offsets = [0, 2], sizes = [4, 78], strides = [1, 1]} : vector<4x100xf32> to vector<4x78xf32>
    %c8_30 = arith.constant 8 : index
    %c0_31 = arith.constant 0 : index
    %40 = vector.load %arg16[%c8_30, %c0_31] : memref<108x78xf32, #tpu.memory_space<vmem>>, vector<4x78xf32>
    tpu.vector_store %arg16[%c8_30, %c0_31], %39 {strides = array<i32>} : memref<108x78xf32, #tpu.memory_space<vmem>>, vector<4x78xf32>,
    %41 = vector.extract_strided_slice %34 {offsets = [0, 10], sizes = [4, 78], strides = [1, 1]} : vector<4x100xf32> to vector<4x78xf32>
    %c12_32 = arith.constant 12 : index
    %c0_33 = arith.constant 0 : index
    %42 = vector.load %arg16[%c12_32, %c0_33] : memref<108x78xf32, #tpu.memory_space<vmem>>, vector<4x78xf32>
    tpu.vector_store %arg16[%c12_32, %c0_33], %41 {strides = array<i32>} : memref<108x78xf32, #tpu.memory_space<vmem>>, vector<4x78xf32>,
    %43 = vector.extract_strided_slice %34 {offsets = [0, 11], sizes = [4, 78], strides = [1, 1]} : vector<4x100xf32> to vector<4x78xf32>
    %c16_34 = arith.constant 16 : index
    %c0_35 = arith.constant 0 : index
    %44 = vector.load %arg16[%c16_34, %c0_35] : memref<108x78xf32, #tpu.memory_space<vmem>>, vector<4x78xf32>
    tpu.vector_store %arg16[%c16_34, %c0_35], %43 {strides = array<i32>} : memref<108x78xf32, #tpu.memory_space<vmem>>, vector<4x78xf32>,
    %45 = vector.extract_strided_slice %34 {offsets = [0, 12], sizes = [4, 78], strides = [1, 1]} : vector<4x100xf32> to vector<4x78xf32>
    %c20_36 = arith.constant 20 : index
    %c0_37 = arith.constant 0 : index
    %46 = vector.load %arg16[%c20_36, %c0_37] : memref<108x78xf32, #tpu.memory_space<vmem>>, vector<4x78xf32>
    tpu.vector_store %arg16[%c20_36, %c0_37], %45 {strides = array<i32>} : memref<108x78xf32, #tpu.memory_space<vmem>>, vector<4x78xf32>,
    %47 = vector.extract_strided_slice %34 {offsets = [0, 20], sizes = [4, 78], strides = [1, 1]} : vector<4x100xf32> to vector<4x78xf32>
    %c24_38 = arith.constant 24 : index
    %c0_39 = arith.constant 0 : index
    %48 = vector.load %arg16[%c24_38, %c0_39] : memref<108x78xf32, #tpu.memory_space<vmem>>, vector<4x78xf32>
    tpu.vector_store %arg16[%c24_38, %c0_39], %47 {strides = array<i32>} : memref<108x78xf32, #tpu.memory_space<vmem>>, vector<4x78xf32>,
    %49 = vector.extract_strided_slice %34 {offsets = [0, 21], sizes = [4, 78], strides = [1, 1]} : vector<4x100xf32> to vector<4x78xf32>
    %c28_40 = arith.constant 28 : index
    %c0_41 = arith.constant 0 : index
    %50 = vector.load %arg16[%c28_40, %c0_41] : memref<108x78xf32, #tpu.memory_space<vmem>>, vector<4x78xf32>
    tpu.vector_store %arg16[%c28_40, %c0_41], %49 {strides = array<i32>} : memref<108x78xf32, #tpu.memory_space<vmem>>, vector<4x78xf32>,
    %51 = vector.extract_strided_slice %34 {offsets = [0, 22], sizes = [4, 78], strides = [1, 1]} : vector<4x100xf32> to vector<4x78xf32>
    %c32_42 = arith.constant 32 : index
    %c0_43 = arith.constant 0 : index
    %52 = vector.load %arg16[%c32_42, %c0_43] : memref<108x78xf32, #tpu.memory_space<vmem>>, vector<4x78xf32>
    tpu.vector_store %arg16[%c32_42, %c0_43], %51 {strides = array<i32>} : memref<108x78xf32, #tpu.memory_space<vmem>>, vector<4x78xf32>,
    %c0_44 = arith.constant 0 : index
    %c0_45 = arith.constant 0 : index
    %53 = vector.load %arg8[%c0_44, %c0_45] : memref<22x100xf32, #tpu.memory_space<vmem>>, vector<22x100xf32>
    %cst_46 = arith.constant dense<0.000000e+00> : vector<8x100xf32>
    %54 = tpu.matmul %32, %53, %cst_46 {dimension_numbers = #tpu.dot_dimension_numbers<[1], [0], [0], [1], [0, 0, 1, 1], [], []>} : vector<8x22xf32>, vector<22x100xf32>, vector<8x100xf32> -> vector<8x100xf32>
    %55 = vector.extract_strided_slice %54 {offsets = [0, 0], sizes = [8, 78], strides = [1, 1]} : vector<8x100xf32> to vector<8x78xf32>
    %c36 = arith.constant 36 : index
    %c0_47 = arith.constant 0 : index
    %56 = vector.load %arg16[%c36, %c0_47] : memref<108x78xf32, #tpu.memory_space<vmem>>, vector<8x78xf32>
    tpu.vector_store %arg16[%c36, %c0_47], %55 {strides = array<i32>} : memref<108x78xf32, #tpu.memory_space<vmem>>, vector<8x78xf32>,
    %57 = vector.extract_strided_slice %54 {offsets = [0, 1], sizes = [8, 78], strides = [1, 1]} : vector<8x100xf32> to vector<8x78xf32>
    %c44 = arith.constant 44 : index
    %c0_48 = arith.constant 0 : index
    %58 = vector.load %arg16[%c44, %c0_48] : memref<108x78xf32, #tpu.memory_space<vmem>>, vector<8x78xf32>
    tpu.vector_store %arg16[%c44, %c0_48], %57 {strides = array<i32>} : memref<108x78xf32, #tpu.memory_space<vmem>>, vector<8x78xf32>,
    %59 = vector.extract_strided_slice %54 {offsets = [0, 2], sizes = [8, 78], strides = [1, 1]} : vector<8x100xf32> to vector<8x78xf32>
    %c52 = arith.constant 52 : index
    %c0_49 = arith.constant 0 : index
    %60 = vector.load %arg16[%c52, %c0_49] : memref<108x78xf32, #tpu.memory_space<vmem>>, vector<8x78xf32>
    tpu.vector_store %arg16[%c52, %c0_49], %59 {strides = array<i32>} : memref<108x78xf32, #tpu.memory_space<vmem>>, vector<8x78xf32>,
    %61 = vector.extract_strided_slice %54 {offsets = [0, 10], sizes = [8, 78], strides = [1, 1]} : vector<8x100xf32> to vector<8x78xf32>
    %c60 = arith.constant 60 : index
    %c0_50 = arith.constant 0 : index
    %62 = vector.load %arg16[%c60, %c0_50] : memref<108x78xf32, #tpu.memory_space<vmem>>, vector<8x78xf32>
    tpu.vector_store %arg16[%c60, %c0_50], %61 {strides = array<i32>} : memref<108x78xf32, #tpu.memory_space<vmem>>, vector<8x78xf32>,
    %63 = vector.extract_strided_slice %54 {offsets = [0, 11], sizes = [8, 78], strides = [1, 1]} : vector<8x100xf32> to vector<8x78xf32>
    %c68 = arith.constant 68 : index
    %c0_51 = arith.constant 0 : index
    %64 = vector.load %arg16[%c68, %c0_51] : memref<108x78xf32, #tpu.memory_space<vmem>>, vector<8x78xf32>
    tpu.vector_store %arg16[%c68, %c0_51], %63 {strides = array<i32>} : memref<108x78xf32, #tpu.memory_space<vmem>>, vector<8x78xf32>,
    %65 = vector.extract_strided_slice %54 {offsets = [0, 12], sizes = [8, 78], strides = [1, 1]} : vector<8x100xf32> to vector<8x78xf32>
    %c76 = arith.constant 76 : index
    %c0_52 = arith.constant 0 : index
    %66 = vector.load %arg16[%c76, %c0_52] : memref<108x78xf32, #tpu.memory_space<vmem>>, vector<8x78xf32>
    tpu.vector_store %arg16[%c76, %c0_52], %65 {strides = array<i32>} : memref<108x78xf32, #tpu.memory_space<vmem>>, vector<8x78xf32>,
    %67 = vector.extract_strided_slice %54 {offsets = [0, 20], sizes = [8, 78], strides = [1, 1]} : vector<8x100xf32> to vector<8x78xf32>
    %c84 = arith.constant 84 : index
    %c0_53 = arith.constant 0 : index
    %68 = vector.load %arg16[%c84, %c0_53] : memref<108x78xf32, #tpu.memory_space<vmem>>, vector<8x78xf32>
    tpu.vector_store %arg16[%c84, %c0_53], %67 {strides = array<i32>} : memref<108x78xf32, #tpu.memory_space<vmem>>, vector<8x78xf32>,
    %69 = vector.extract_strided_slice %54 {offsets = [0, 21], sizes = [8, 78], strides = [1, 1]} : vector<8x100xf32> to vector<8x78xf32>
    %c92 = arith.constant 92 : index
    %c0_54 = arith.constant 0 : index
    %70 = vector.load %arg16[%c92, %c0_54] : memref<108x78xf32, #tpu.memory_space<vmem>>, vector<8x78xf32>
    tpu.vector_store %arg16[%c92, %c0_54], %69 {strides = array<i32>} : memref<108x78xf32, #tpu.memory_space<vmem>>, vector<8x78xf32>,
    %71 = vector.extract_strided_slice %54 {offsets = [0, 22], sizes = [8, 78], strides = [1, 1]} : vector<8x100xf32> to vector<8x78xf32>
    %c100 = arith.constant 100 : index
    %c0_55 = arith.constant 0 : index
    %72 = vector.load %arg16[%c100, %c0_55] : memref<108x78xf32, #tpu.memory_space<vmem>>, vector<8x78xf32>
    tpu.vector_store %arg16[%c100, %c0_55], %71 {strides = array<i32>} : memref<108x78xf32, #tpu.memory_space<vmem>>, vector<8x78xf32>,
    %c0_56 = arith.constant 0 : index
    %c0_57 = arith.constant 0 : index
    %73 = vector.load %arg5[%c0_56, %c0_57] : memref<8x108xf32, #tpu.memory_space<vmem>>, vector<8x108xf32>
    %c0_58 = arith.constant 0 : index
    %c0_59 = arith.constant 0 : index
    %74 = vector.load %arg16[%c0_58, %c0_59] : memref<108x78xf32, #tpu.memory_space<vmem>>, vector<108x78xf32>
    %cst_60 = arith.constant dense<0.000000e+00> : vector<8x78xf32>
    %75 = tpu.matmul %73, %74, %cst_60 {dimension_numbers = #tpu.dot_dimension_numbers<[1], [0], [0], [1], [0, 0, 1, 1], [], []>} : vector<8x108xf32>, vector<108x78xf32>, vector<8x78xf32> -> vector<8x78xf32>
    %c0_61 = arith.constant 0 : index
    %c0_62 = arith.constant 0 : index
    %76 = vector.load %arg6[%c0_61, %c0_62] : memref<8x1xf32, #tpu.memory_space<vmem>>, vector<8x1xf32>
    %77 = vector.broadcast %76 : vector<8x1xf32> to vector<8x78xf32>
    %78 = arith.addf %75, %77 : vector<8x78xf32>
    %cst_63 = arith.constant 0.000000e+00 : f32
    %79 = vector.broadcast %cst_63 : f32 to vector<8x78xf32>
    %80 = arith.cmpf oge, %78, %79 : vector<8x78xf32>
    %cst_64 = arith.constant 2.000000e-01 : f32
    %81 = vector.broadcast %cst_64 : f32 to vector<8x78xf32>
    %82 = arith.mulf %81, %78 : vector<8x78xf32>
    %83 = arith.select %80, %78, %82 : vector<8x78xi1>, vector<8x78xf32>
    %c0_65 = arith.constant 0 : index
    %c0_66 = arith.constant 0 : index
    %84 = vector.load %arg11[%c0_65, %c0_66] : memref<256x324xf32, #tpu.memory_space<vmem>>, vector<256x324xf32>
    %cst_67 = arith.constant dense<0.000000e+00> : vector<4x324xf32>
    %85 = tpu.matmul %1, %84, %cst_67 {dimension_numbers = #tpu.dot_dimension_numbers<[1], [0], [0], [1], [0, 0, 1, 1], [], []>} : vector<4x256xf32>, vector<256x324xf32>, vector<4x324xf32> -> vector<4x324xf32>
    %86 = vector.extract_strided_slice %85 {offsets = [0, 0], sizes = [4, 286], strides = [1, 1]} : vector<4x324xf32> to vector<4x286xf32>
    %c0_68 = arith.constant 0 : index
    %c0_69 = arith.constant 0 : index
    %87 = vector.load %arg17[%c0_68, %c0_69] : memref<108x286xf32, #tpu.memory_space<vmem>>, vector<4x286xf32>
    tpu.vector_store %arg17[%c0_68, %c0_69], %86 {strides = array<i32>} : memref<108x286xf32, #tpu.memory_space<vmem>>, vector<4x286xf32>,
    %88 = vector.extract_strided_slice %85 {offsets = [0, 1], sizes = [4, 286], strides = [1, 1]} : vector<4x324xf32> to vector<4x286xf32>
    %c4_70 = arith.constant 4 : index
    %c0_71 = arith.constant 0 : index
    %89 = vector.load %arg17[%c4_70, %c0_71] : memref<108x286xf32, #tpu.memory_space<vmem>>, vector<4x286xf32>
    tpu.vector_store %arg17[%c4_70, %c0_71], %88 {strides = array<i32>} : memref<108x286xf32, #tpu.memory_space<vmem>>, vector<4x286xf32>,
    %90 = vector.extract_strided_slice %85 {offsets = [0, 2], sizes = [4, 286], strides = [1, 1]} : vector<4x324xf32> to vector<4x286xf32>
    %c8_72 = arith.constant 8 : index
    %c0_73 = arith.constant 0 : index
    %91 = vector.load %arg17[%c8_72, %c0_73] : memref<108x286xf32, #tpu.memory_space<vmem>>, vector<4x286xf32>
    tpu.vector_store %arg17[%c8_72, %c0_73], %90 {strides = array<i32>} : memref<108x286xf32, #tpu.memory_space<vmem>>, vector<4x286xf32>,
    %92 = vector.extract_strided_slice %85 {offsets = [0, 18], sizes = [4, 286], strides = [1, 1]} : vector<4x324xf32> to vector<4x286xf32>
    %c12_74 = arith.constant 12 : index
    %c0_75 = arith.constant 0 : index
    %93 = vector.load %arg17[%c12_74, %c0_75] : memref<108x286xf32, #tpu.memory_space<vmem>>, vector<4x286xf32>
    tpu.vector_store %arg17[%c12_74, %c0_75], %92 {strides = array<i32>} : memref<108x286xf32, #tpu.memory_space<vmem>>, vector<4x286xf32>,
    %94 = vector.extract_strided_slice %85 {offsets = [0, 19], sizes = [4, 286], strides = [1, 1]} : vector<4x324xf32> to vector<4x286xf32>
    %c16_76 = arith.constant 16 : index
    %c0_77 = arith.constant 0 : index
    %95 = vector.load %arg17[%c16_76, %c0_77] : memref<108x286xf32, #tpu.memory_space<vmem>>, vector<4x286xf32>
    tpu.vector_store %arg17[%c16_76, %c0_77], %94 {strides = array<i32>} : memref<108x286xf32, #tpu.memory_space<vmem>>, vector<4x286xf32>,
    %96 = vector.extract_strided_slice %85 {offsets = [0, 20], sizes = [4, 286], strides = [1, 1]} : vector<4x324xf32> to vector<4x286xf32>
    %c20_78 = arith.constant 20 : index
    %c0_79 = arith.constant 0 : index
    %97 = vector.load %arg17[%c20_78, %c0_79] : memref<108x286xf32, #tpu.memory_space<vmem>>, vector<4x286xf32>
    tpu.vector_store %arg17[%c20_78, %c0_79], %96 {strides = array<i32>} : memref<108x286xf32, #tpu.memory_space<vmem>>, vector<4x286xf32>,
    %98 = vector.extract_strided_slice %85 {offsets = [0, 36], sizes = [4, 286], strides = [1, 1]} : vector<4x324xf32> to vector<4x286xf32>
    %c24_80 = arith.constant 24 : index
    %c0_81 = arith.constant 0 : index
    %99 = vector.load %arg17[%c24_80, %c0_81] : memref<108x286xf32, #tpu.memory_space<vmem>>, vector<4x286xf32>
    tpu.vector_store %arg17[%c24_80, %c0_81], %98 {strides = array<i32>} : memref<108x286xf32, #tpu.memory_space<vmem>>, vector<4x286xf32>,
    %100 = vector.extract_strided_slice %85 {offsets = [0, 37], sizes = [4, 286], strides = [1, 1]} : vector<4x324xf32> to vector<4x286xf32>
    %c28_82 = arith.constant 28 : index
    %c0_83 = arith.constant 0 : index
    %101 = vector.load %arg17[%c28_82, %c0_83] : memref<108x286xf32, #tpu.memory_space<vmem>>, vector<4x286xf32>
    tpu.vector_store %arg17[%c28_82, %c0_83], %100 {strides = array<i32>} : memref<108x286xf32, #tpu.memory_space<vmem>>, vector<4x286xf32>,
    %102 = vector.extract_strided_slice %85 {offsets = [0, 38], sizes = [4, 286], strides = [1, 1]} : vector<4x324xf32> to vector<4x286xf32>
    %c32_84 = arith.constant 32 : index
    %c0_85 = arith.constant 0 : index
    %103 = vector.load %arg17[%c32_84, %c0_85] : memref<108x286xf32, #tpu.memory_space<vmem>>, vector<4x286xf32>
    tpu.vector_store %arg17[%c32_84, %c0_85], %102 {strides = array<i32>} : memref<108x286xf32, #tpu.memory_space<vmem>>, vector<4x286xf32>,
    %c0_86 = arith.constant 0 : index
    %c0_87 = arith.constant 0 : index
    %104 = vector.load %arg12[%c0_86, %c0_87] : memref<78x324xf32, #tpu.memory_space<vmem>>, vector<78x324xf32>
    %cst_88 = arith.constant dense<0.000000e+00> : vector<8x324xf32>
    %105 = tpu.matmul %83, %104, %cst_88 {dimension_numbers = #tpu.dot_dimension_numbers<[1], [0], [0], [1], [0, 0, 1, 1], [], []>} : vector<8x78xf32>, vector<78x324xf32>, vector<8x324xf32> -> vector<8x324xf32>
    %106 = vector.extract_strided_slice %105 {offsets = [0, 0], sizes = [8, 286], strides = [1, 1]} : vector<8x324xf32> to vector<8x286xf32>
    %c36_89 = arith.constant 36 : index
    %c0_90 = arith.constant 0 : index
    %107 = vector.load %arg17[%c36_89, %c0_90] : memref<108x286xf32, #tpu.memory_space<vmem>>, vector<8x286xf32>
    tpu.vector_store %arg17[%c36_89, %c0_90], %106 {strides = array<i32>} : memref<108x286xf32, #tpu.memory_space<vmem>>, vector<8x286xf32>,
    %108 = vector.extract_strided_slice %105 {offsets = [0, 1], sizes = [8, 286], strides = [1, 1]} : vector<8x324xf32> to vector<8x286xf32>
    %c44_91 = arith.constant 44 : index
    %c0_92 = arith.constant 0 : index
    %109 = vector.load %arg17[%c44_91, %c0_92] : memref<108x286xf32, #tpu.memory_space<vmem>>, vector<8x286xf32>
    tpu.vector_store %arg17[%c44_91, %c0_92], %108 {strides = array<i32>} : memref<108x286xf32, #tpu.memory_space<vmem>>, vector<8x286xf32>,
    %110 = vector.extract_strided_slice %105 {offsets = [0, 2], sizes = [8, 286], strides = [1, 1]} : vector<8x324xf32> to vector<8x286xf32>
    %c52_93 = arith.constant 52 : index
    %c0_94 = arith.constant 0 : index
    %111 = vector.load %arg17[%c52_93, %c0_94] : memref<108x286xf32, #tpu.memory_space<vmem>>, vector<8x286xf32>
    tpu.vector_store %arg17[%c52_93, %c0_94], %110 {strides = array<i32>} : memref<108x286xf32, #tpu.memory_space<vmem>>, vector<8x286xf32>,
    %112 = vector.extract_strided_slice %105 {offsets = [0, 18], sizes = [8, 286], strides = [1, 1]} : vector<8x324xf32> to vector<8x286xf32>
    %c60_95 = arith.constant 60 : index
    %c0_96 = arith.constant 0 : index
    %113 = vector.load %arg17[%c60_95, %c0_96] : memref<108x286xf32, #tpu.memory_space<vmem>>, vector<8x286xf32>
    tpu.vector_store %arg17[%c60_95, %c0_96], %112 {strides = array<i32>} : memref<108x286xf32, #tpu.memory_space<vmem>>, vector<8x286xf32>,
    %114 = vector.extract_strided_slice %105 {offsets = [0, 19], sizes = [8, 286], strides = [1, 1]} : vector<8x324xf32> to vector<8x286xf32>
    %c68_97 = arith.constant 68 : index
    %c0_98 = arith.constant 0 : index
    %115 = vector.load %arg17[%c68_97, %c0_98] : memref<108x286xf32, #tpu.memory_space<vmem>>, vector<8x286xf32>
    tpu.vector_store %arg17[%c68_97, %c0_98], %114 {strides = array<i32>} : memref<108x286xf32, #tpu.memory_space<vmem>>, vector<8x286xf32>,
    %116 = vector.extract_strided_slice %105 {offsets = [0, 20], sizes = [8, 286], strides = [1, 1]} : vector<8x324xf32> to vector<8x286xf32>
    %c76_99 = arith.constant 76 : index
    %c0_100 = arith.constant 0 : index
    %117 = vector.load %arg17[%c76_99, %c0_100] : memref<108x286xf32, #tpu.memory_space<vmem>>, vector<8x286xf32>
    tpu.vector_store %arg17[%c76_99, %c0_100], %116 {strides = array<i32>} : memref<108x286xf32, #tpu.memory_space<vmem>>, vector<8x286xf32>,
    %118 = vector.extract_strided_slice %105 {offsets = [0, 36], sizes = [8, 286], strides = [1, 1]} : vector<8x324xf32> to vector<8x286xf32>
    %c84_101 = arith.constant 84 : index
    %c0_102 = arith.constant 0 : index
    %119 = vector.load %arg17[%c84_101, %c0_102] : memref<108x286xf32, #tpu.memory_space<vmem>>, vector<8x286xf32>
    tpu.vector_store %arg17[%c84_101, %c0_102], %118 {strides = array<i32>} : memref<108x286xf32, #tpu.memory_space<vmem>>, vector<8x286xf32>,
    %120 = vector.extract_strided_slice %105 {offsets = [0, 37], sizes = [8, 286], strides = [1, 1]} : vector<8x324xf32> to vector<8x286xf32>
    %c92_103 = arith.constant 92 : index
    %c0_104 = arith.constant 0 : index
    %121 = vector.load %arg17[%c92_103, %c0_104] : memref<108x286xf32, #tpu.memory_space<vmem>>, vector<8x286xf32>
    tpu.vector_store %arg17[%c92_103, %c0_104], %120 {strides = array<i32>} : memref<108x286xf32, #tpu.memory_space<vmem>>, vector<8x286xf32>,
    %122 = vector.extract_strided_slice %105 {offsets = [0, 38], sizes = [8, 286], strides = [1, 1]} : vector<8x324xf32> to vector<8x286xf32>
    %c100_105 = arith.constant 100 : index
    %c0_106 = arith.constant 0 : index
    %123 = vector.load %arg17[%c100_105, %c0_106] : memref<108x286xf32, #tpu.memory_space<vmem>>, vector<8x286xf32>
    tpu.vector_store %arg17[%c100_105, %c0_106], %122 {strides = array<i32>} : memref<108x286xf32, #tpu.memory_space<vmem>>, vector<8x286xf32>,
    %c0_107 = arith.constant 0 : index
    %c0_108 = arith.constant 0 : index
    %124 = vector.load %arg9[%c0_107, %c0_108] : memref<6x108xf32, #tpu.memory_space<vmem>>, vector<6x108xf32>
    %c0_109 = arith.constant 0 : index
    %c0_110 = arith.constant 0 : index
    %125 = vector.load %arg17[%c0_109, %c0_110] : memref<108x286xf32, #tpu.memory_space<vmem>>, vector<108x286xf32>
    %cst_111 = arith.constant dense<0.000000e+00> : vector<6x286xf32>
    %126 = tpu.matmul %124, %125, %cst_111 {dimension_numbers = #tpu.dot_dimension_numbers<[1], [0], [0], [1], [0, 0, 1, 1], [], []>} : vector<6x108xf32>, vector<108x286xf32>, vector<6x286xf32> -> vector<6x286xf32>
    %c0_112 = arith.constant 0 : index
    %c0_113 = arith.constant 0 : index
    %127 = vector.load %arg10[%c0_112, %c0_113] : memref<6x1xf32, #tpu.memory_space<vmem>>, vector<6x1xf32>
    %128 = vector.broadcast %127 : vector<6x1xf32> to vector<6x286xf32>
    %129 = arith.addf %126, %128 : vector<6x286xf32>
    %cst_114 = arith.constant 0.000000e+00 : f32
    %130 = vector.broadcast %cst_114 : f32 to vector<6x286xf32>
    %131 = arith.cmpf oge, %129, %130 : vector<6x286xf32>
    %cst_115 = arith.constant 2.000000e-01 : f32
    %132 = vector.broadcast %cst_115 : f32 to vector<6x286xf32>
    %133 = arith.mulf %132, %129 : vector<6x286xf32>
    %134 = arith.select %131, %129, %133 : vector<6x286xi1>, vector<6x286xf32>
    %c0_116 = arith.constant 0 : index
    %c0_117 = arith.constant 0 : index
    %135 = vector.load %arg13[%c0_116, %c0_117] : memref<286x256xf32, #tpu.memory_space<vmem>>, vector<286x256xf32>
    %cst_118 = arith.constant dense<0.000000e+00> : vector<6x256xf32>
    %136 = tpu.matmul %134, %135, %cst_118 {dimension_numbers = #tpu.dot_dimension_numbers<[1], [0], [0], [1], [0, 0, 1, 1], [], []>} : vector<6x286xf32>, vector<286x256xf32>, vector<6x256xf32> -> vector<6x256xf32>
    %c0_119 = arith.constant 0 : index
    %c0_120 = arith.constant 0 : index
    %c0_121 = arith.constant 0 : index
    %137 = vector.load %arg14[%c0_119, %c0_120, %c0_121] : memref<1x6x256xf32, #tpu.memory_space<vmem>>, vector<1x6x256xf32>
    %138 = vector.shape_cast %137 : vector<1x6x256xf32> to vector<6x256xf32>
    %139 = vector.shape_cast %136 : vector<6x256xf32> to vector<1x6x256xf32>
    tpu.vector_store %arg14[%c0_119, %c0_120, %c0_121], %139 {strides = array<i32>} : memref<1x6x256xf32, #tpu.memory_space<vmem>>, vector<1x6x256xf32>,
    return
  }
  func.func @transform_0(%arg0: i32) -> (i32, i32, i32) {
    %c0_i32 = arith.constant 0 : i32
    %c0_i32_0 = arith.constant 0 : i32
    %c0_i32_1 = arith.constant 0 : i32
    return %arg0, %c0_i32, %c0_i32_0 : i32, i32, i32
  }
  func.func @transform_1(%arg0: i32) -> (i32, i32) {
    %c0_i32 = arith.constant 0 : i32
    %c0_i32_0 = arith.constant 0 : i32
    %c0_i32_1 = arith.constant 0 : i32
    return %c0_i32, %c0_i32_0 : i32, i32
  }
  func.func @transform_2(%arg0: i32) -> (i32, i32) {
    %c0_i32 = arith.constant 0 : i32
    %c0_i32_0 = arith.constant 0 : i32
    %c0_i32_1 = arith.constant 0 : i32
    return %c0_i32, %c0_i32_0 : i32, i32
  }
  func.func @transform_3(%arg0: i32) -> (i32, i32) {
    %c0_i32 = arith.constant 0 : i32
    %c0_i32_0 = arith.constant 0 : i32
    %c0_i32_1 = arith.constant 0 : i32
    return %c0_i32, %c0_i32_0 : i32, i32
  }
  func.func @transform_4(%arg0: i32) -> (i32, i32) {
    %c0_i32 = arith.constant 0 : i32
    %c0_i32_0 = arith.constant 0 : i32
    %c0_i32_1 = arith.constant 0 : i32
    return %c0_i32, %c0_i32_0 : i32, i32
  }
  func.func @transform_5(%arg0: i32) -> (i32, i32) {
    %c0_i32 = arith.constant 0 : i32
    %c0_i32_0 = arith.constant 0 : i32
    %c0_i32_1 = arith.constant 0 : i32
    return %c0_i32, %c0_i32_0 : i32, i32
  }
  func.func @transform_6(%arg0: i32) -> (i32, i32) {
    %c0_i32 = arith.constant 0 : i32
    %c0_i32_0 = arith.constant 0 : i32
    %c0_i32_1 = arith.constant 0 : i32
    return %c0_i32, %c0_i32_0 : i32, i32
  }
  func.func @transform_7(%arg0: i32) -> (i32, i32) {
    %c0_i32 = arith.constant 0 : i32
    %c0_i32_0 = arith.constant 0 : i32
    %c0_i32_1 = arith.constant 0 : i32
    return %c0_i32, %c0_i32_0 : i32, i32
  }
  func.func @transform_8(%arg0: i32) -> (i32, i32) {
    %c0_i32 = arith.constant 0 : i32
    %c0_i32_0 = arith.constant 0 : i32
    %c0_i32_1 = arith.constant 0 : i32
    return %c0_i32, %c0_i32_0 : i32, i32
  }
  func.func @transform_9(%arg0: i32) -> (i32, i32) {
    %c0_i32 = arith.constant 0 : i32
    %c0_i32_0 = arith.constant 0 : i32
    %c0_i32_1 = arith.constant 0 : i32
    return %c0_i32, %c0_i32_0 : i32, i32
  }
  func.func @transform_10(%arg0: i32) -> (i32, i32) {
    %c0_i32 = arith.constant 0 : i32
    %c0_i32_0 = arith.constant 0 : i32
    %c0_i32_1 = arith.constant 0 : i32
    return %c0_i32, %c0_i32_0 : i32, i32
  }
  func.func @transform_11(%arg0: i32) -> (i32, i32) {
    %c0_i32 = arith.constant 0 : i32
    %c0_i32_0 = arith.constant 0 : i32
    %c0_i32_1 = arith.constant 0 : i32
    return %c0_i32, %c0_i32_0 : i32, i32
  }
  func.func @transform_12(%arg0: i32) -> (i32, i32) {
    %c0_i32 = arith.constant 0 : i32
    %c0_i32_0 = arith.constant 0 : i32
    %c0_i32_1 = arith.constant 0 : i32
    return %c0_i32, %c0_i32_0 : i32, i32
  }
  func.func @transform_13(%arg0: i32) -> (i32, i32, i32) {
    %c0_i32 = arith.constant 0 : i32
    %c0_i32_0 = arith.constant 0 : i32
    %c0_i32_1 = arith.constant 0 : i32
    return %arg0, %c0_i32, %c0_i32_0 : i32, i32, i32
  }
}

</mosaic_0001>

<bundles_post_ra>
// kernel: b2s_conv_module_pallas.1
= control target key start
LH: loop header
LB: loop body
LE: loop exit
PB: predicated region body
PF: predicated region fallthrough
CT: control target
= control target key end

     0   :  { %s2649_s25 = smov 0   ;;  %s3772_s0 = inlined_call_operand.vmem [shape: f32[2,4,256], index: 0, kind: input, shape index: {}]   ;;  %s3773_s1 = inlined_call_operand.vmem [shape: f32[8,36], index: 1, kind: input, shape index: {}]   ;;  %s3774_s2 = inlined_call_operand.vmem [shape: f32[8,1], index: 2, kind: input, shape index: {}]   ;;  %s3775_s3 = inlined_call_operand.vmem [shape: f32[256,36], index: 3, kind: input, shape index: {}]   ;;  %s3776_s4 = inlined_call_operand.vmem [shape: f32[8,108], index: 4, kind: input, shape index: {}]   ;;  %s3777_s5 = inlined_call_operand.vmem [shape: f32[8,1], index: 5, kind: input, shape index: {}]   ;;  %s3778_s6 = inlined_call_operand.vmem [shape: f32[256,100], index: 6, kind: input, shape index: {}]   ;;  %s3779_s7 = inlined_call_operand.vmem [shape: f32[22,100], index: 7, kind: input, shape index: {}]   ;;  %s3780_s8 = inlined_call_operand.vmem [shape: f32[6,108], index: 8, kind: input, shape index: {}]   ;;  %s3781_s9 = inlined_call_operand.vmem [shape: f32[6,1], index: 9, kind: input, shape index: {}]   ;;  %s3782_s10 = inlined_call_operand.vmem [shape: f32[256,324], index: 10, kind: input, shape index: {}]   ;;  %s3783_s11 = inlined_call_operand.vmem [shape: f32[78,324], index: 11, kind: input, shape index: {}]   ;;  %s3784_s12 = inlined_call_operand.vmem [shape: f32[286,256], index: 12, kind: input, shape index: {}]   ;;  %s3785_s13 = inlined_call_operand.vmem [shape: f32[2,6,256], index: 13, kind: output, shape index: {}]  }
   0x1 LB: > { %s2222_s26 = sadd.s32 4294967295, %s2556_s25   ;;  %p2226_p0 = scmp.ge.s32.totalorder %s2556_s25, 1  ;;  %s2556_s25 = sphi %s2649_s25, %s23_s25  }
   0x2   : > { %p387_p1 = scmp.lt.s32.totalorder %s2556_s25, 3 }
   0x4   : > { %p388_p2 = pnand %p2226_p0, %p387_p1 }
   0x5   : > { %p431_p3 = scmp.lt.s32.totalorder (!%p388_p2), %s2222_s26, 1  ;;  %s2559_s21 = smov (!%p388_p2), 115  }
   0x6   : > { %391 = sbr.rel (%p388_p2) target bundleno = 1900 (0x76c), region = 72  ;;  %s2560_s22 = smov (!%p388_p2), 114  }
   0x7   : > { %s2561_s23 = smov (!%p388_p2), 121   ;;  %s2562_s27 = smov (!%p388_p2), 116  }
   0x8   : > { %s2564_s28 = smov (!%p388_p2), 120   ;;  %s2566_s29 = smov (!%p388_p2), 127  }
   0x9   : > { %s2567_s30 = smov (!%p388_p2), 122   ;;  %s2572_s14 = smov (!%p388_p2), 117  }
   0xa   : > { %s2573_s15 = smov (!%p388_p2), 118   ;;  %s2574_s17 = smov (!%p388_p2), 92  }
   0xb   : > { %v473_v0 = vld [vmem:[%s3775_s3 + $0xf8] sm:$0xff]  ;;  %v472_v2 = vld [vmem:[%s3775_s3 + $0xf0] sm:$0xff]  ;;  %v471_v4 = vld [vmem:[%s3775_s3 + $0xe8] sm:$0xff]  ;;  %s3787_s26 = smov (!%p431_p3, %s2222_s26), 1  ;;  %v2558_v34 = vmov 0.0   ;;  %vm547_vm0 = vcmask 175104  }
   0xc   : > { %v457_v1 = vld [vmem:[%s3775_s3 + $0x78] sm:$0xff]  ;;  %2254 = vmatprep.subr.mxu0 %v473_v0  ;;  %v456_v3 = vld [vmem:[%s3775_s3 + $0x70] sm:$0xff]  ;;  %v455_v5 = vld [vmem:[%s3775_s3 + $0x68] sm:$0xff]  ;;  %s2252_s24 = sshll.u32 %s3787_s26, 3  ;;  %2410 = vmatprep.subr.mxu1 %v2558_v34  ;;  %vm2565_vm1 = vmmov 0   ;;  %v2568_v38 = vmov 0  }
   0xd   : > { %2255 = vmatpush3.msra.mxu0 %v457_v1  ;;  %v470_v6 = vld [vmem:[%s3775_s3 + $0xe0] sm:$0xff]  ;;  %v469_v8 = vld [vmem:[%s3775_s3 + $0xd8] sm:$0xff]  ;;  %s2693_s18 = scalar_lea.vmem %s3772_s0, %s2252_s24  ;;  %v468_v10 = vld [vmem:[%s3775_s3 + $0xd0] sm:$0xff]  ;;  %s2563_s24 = smov 126   ;;  %2420 = vmatprep.mubr.msk.f32.mxu1 %vm2565_vm1, %v2558_v34  ;;  %vm598_vm2 = vcmask 1043456   ;;  %vm594_vm3 = vcmask 293888  }
   0xe   : > { %2256 = vmatprep.subr.mxu0 %v472_v2  ;;  %v454_v7 = vld [vmem:[%s3775_s3 + $0x60] sm:$0xff]  ;;  %v453_v9 = vld [vmem:[%s3775_s3 + $0x58] sm:$0xff]  ;;  %v452_v11 = vld [vmem:[%s3775_s3 + $0x50] sm:$0xff]  ;;  %2546 = vset.pattern.permute.xlu0 %v2568_v38  ;;  %vm819_vm4 = vcmask 1045504   ;;  %vm815_vm6 = vcmask 179200   ;;  %vm777_vm7 = vcmask 633856  }
   0xf   : > { %2257 = vmatpush3.msra.mxu0 %v456_v3  ;;  %v467_v12 = vld [vmem:[%s3775_s3 + $0xc8] sm:$0xff]  ;;  %v2705_v13 = vld [vmem:[%s2693_s18] sm:$0xff]  ;;  %v465_v18 = vld [vmem:[%s3775_s3 + $0xb8] sm:$0xff]  ;;  %2547 = vset.pattern.permute.xlu1 %v2568_v38  ;;  %vm893_vm8 = vcmask 637952   ;;  %vm949_vm9 = vcmask 883712   ;;  %vm1268_vm10 = vcmask 240640  }
  0x10   : > { %2258 = vmatprep.subr.mxu0 %v471_v4  ;;  %v451_v14 = vld [vmem:[%s3775_s3 + $0x48] sm:$0xff]  ;;  %v2712_v15 = vcombine.high %v2705_v13, %v2705_v13  ;;  %v466_v16 = vld [vmem:[%s3775_s3 + $0xc0] sm:$0xff]  ;;  %v449_v19 = vld [vmem:[%s3775_s3 + $0x38] sm:$0xff]  ;;  %s2575_s19 = smov 109   ;;  %s2577_s20 = smov 90   ;;  %vm1290_vm12 = vcmask 244740  }
  0x11   : > { %2259 = vmatpush3.msra.mxu0 %v455_v5  ;;  %v450_v17 = vld [vmem:[%s3775_s3 + $0x40] sm:$0xff]  ;;  %v464_v20 = vld [vmem:[%s3775_s3 + $0xb0] sm:$0xff]  ;;  %v463_v22 = vld [vmem:[%s3775_s3 + $0xa8] sm:$0xff]  ;;  %vm1387_vm13 = vcmask 736256   ;;  %vm1357_vm14 = vcmask 752640   ;;  %vm1328_vm15 = vcmask 891904  }
  0x12   : > { %2260 = vmatprep.subr.mxu0 %v470_v6  ;;  %541 = vmatprep.mubr.f32.mxu0 %v2712_v15  ;;  %v448_v21 = vld [vmem:[%s3775_s3 + $0x30] sm:$0xff]  ;;  %v447_v23 = vld [vmem:[%s3775_s3 + $0x28] sm:$0xff]  ;;  %v462_v24 = vld [vmem:[%s3775_s3 + $0xa0] sm:$0xff] }
  0x13   : > { %2261 = vmatpush3.msra.mxu0 %v454_v7  ;;  %v446_v25 = vld [vmem:[%s3775_s3 + $0x20] sm:$0xff]  ;;  %v461_v26 = vld [vmem:[%s3775_s3 + $0x98] sm:$0xff]  ;;  %v460_v28 = vld [vmem:[%s3775_s3 + $0x90] sm:$0xff] }
  0x14   : > { %2262 = vmatprep.subr.mxu0 %v469_v8  ;;  %v445_v27 = vld [vmem:[%s3775_s3 + $0x18] sm:$0xff]  ;;  %v444_v29 = vld [vmem:[%s3775_s3 + $0x10] sm:$0xff]  ;;  %v459_v30 = vld [vmem:[%s3775_s3 + $0x88] sm:$0xff] }
  0x15   : > { %2263 = vmatpush3.msra.mxu0 %v453_v9  ;;  %v443_v31 = vld [vmem:[%s3775_s3 + $0x8] sm:$0xff]  ;;  %v458_v32 = vld [vmem:[%s3775_s3 + $0x80] sm:$0xff]  ;;  %v706_v53 = vld [vmem:[%s3778_s6 + $0xf8] sm:$0xff] }
  0x16   : > { %2264 = vmatprep.subr.mxu0 %v468_v10  ;;  %v442_v33 = vld [vmem:[%s3775_s3] sm:$0xff]  ;;  %v690_v55 = vld [vmem:[%s3778_s6 + $0x78] sm:$0xff]  ;;  %v705_v56 = vld [vmem:[%s3778_s6 + $0xf0] sm:$0xff] }
  0x17   : > { %2265 = vmatpush3.msra.mxu0 %v452_v11  ;;  %v588_v39 = vld [vmem:[%s3774_s2] sm:$0xff]  ;;  %v689_v57 = vld [vmem:[%s3778_s6 + $0x70] sm:$0xff]  ;;  %v704_v58 = vld [vmem:[%s3778_s6 + $0xe8] sm:$0xff] }
  0x18   : > { %2266 = vmatprep.subr.mxu0 %v467_v12  ;;  %v582_v52 = vld [vmem:[%s3773_s1] sm:$0xff]  ;;  %v688_v59 = vld [vmem:[%s3778_s6 + $0x68] sm:$0xff]  ;;  %v702_v62 = vld [vmem:[%s3778_s6 + $0xd8] sm:$0xff] }
  0x19   : > { %2267 = vmatpush3.msra.mxu0 %v451_v14  ;;  %v703_v60 = vld [vmem:[%s3778_s6 + $0xe0] sm:$0xff]  ;;  %v686_v63 = vld [vmem:[%s3778_s6 + $0x58] sm:$0xff]  ;;  %v701_v0 = vld [vmem:[%s3778_s6 + $0xd0] sm:$0xff] }
  0x1a   : > { %2268 = vmatprep.subr.mxu0 %v466_v16  ;;  %v687_v61 = vld [vmem:[%s3778_s6 + $0x60] sm:$0xff]  ;;  %v685_v1 = vld [vmem:[%s3778_s6 + $0x50] sm:$0xff]  ;;  %v700_v2 = vld [vmem:[%s3778_s6 + $0xc8] sm:$0xff] }
  0x1b   : > { %2269 = vmatpush3.msra.mxu0 %v450_v17  ;;  %v684_v3 = vld [vmem:[%s3778_s6 + $0x48] sm:$0xff]  ;;  %v699_v4 = vld [vmem:[%s3778_s6 + $0xc0] sm:$0xff]  ;;  %v698_v6 = vld [vmem:[%s3778_s6 + $0xb8] sm:$0xff] }
  0x1c   : > { %2270 = vmatprep.subr.mxu0 %v465_v18  ;;  %v683_v5 = vld [vmem:[%s3778_s6 + $0x40] sm:$0xff]  ;;  %v682_v7 = vld [vmem:[%s3778_s6 + $0x38] sm:$0xff]  ;;  %v697_v8 = vld [vmem:[%s3778_s6 + $0xb0] sm:$0xff] }
  0x1d   : > { %2271 = vmatpush3.msra.mxu0 %v449_v19  ;;  %v681_v9 = vld [vmem:[%s3778_s6 + $0x30] sm:$0xff]  ;;  %v696_v10 = vld [vmem:[%s3778_s6 + $0xa8] sm:$0xff]  ;;  %v695_v12 = vld [vmem:[%s3778_s6 + $0xa0] sm:$0xff] }
  0x1e   : > { %2272 = vmatprep.subr.mxu0 %v464_v20  ;;  %v680_v11 = vld [vmem:[%s3778_s6 + $0x28] sm:$0xff]  ;;  %v679_v14 = vld [vmem:[%s3778_s6 + $0x20] sm:$0xff]  ;;  %v694_v16 = vld [vmem:[%s3778_s6 + $0x98] sm:$0xff] }
  0x1f   : > { %2273 = vmatpush3.msra.mxu0 %v448_v21  ;;  %v678_v17 = vld [vmem:[%s3778_s6 + $0x18] sm:$0xff]  ;;  %v693_v18 = vld [vmem:[%s3778_s6 + $0x90] sm:$0xff]  ;;  %v692_v20 = vld [vmem:[%s3778_s6 + $0x88] sm:$0xff] }
  0x20   : > { %2274 = vmatprep.subr.mxu0 %v463_v22  ;;  %v677_v19 = vld [vmem:[%s3778_s6 + $0x10] sm:$0xff]  ;;  %v676_v21 = vld [vmem:[%s3778_s6 + $0x8] sm:$0xff]  ;;  %v691_v22 = vld [vmem:[%s3778_s6 + $0x80] sm:$0xff] }
  0x21   : > { %2275 = vmatpush3.msra.mxu0 %v447_v23  ;;  %v675_v23 = vld [vmem:[%s3778_s6] sm:$0xff] }
  0x22   : > { %2276 = vmatprep.subr.mxu0 %v462_v24  ;;  %v814_v24 = vld [vmem:[%s3779_s7 + $0x10] sm:$0x3f] }
  0x23   : > { %2277 = vmatpush3.msra.mxu0 %v446_v25  ;;  %v813_v25 = vld [vmem:[%s3779_s7 + $0x8] sm:$0xff] }
  0x24   : > { %2278 = vmatprep.subr.mxu0 %v461_v26  ;;  %v812_v26 = vld [vmem:[%s3779_s7] sm:$0xff] }
  0x25   : > { %2279 = vmatpush3.msra.mxu0 %v445_v27 }
  0x26   : > { %2280 = vmatprep.subr.mxu0 %v460_v28 }
  0x27   : > { %2281 = vmatpush3.msra.mxu0 %v444_v29 }
  0x28   : > { %2282 = vmatprep.subr.mxu0 %v459_v30 }
  0x29   : > { %2283 = vmatpush3.msra.mxu0 %v443_v31 }
  0x2a   : > { %2284 = vmatprep.subr.mxu0 %v458_v32 }
  0x2b   : > { %2285 = vmatpush3.msra.mxu0 %v442_v33 }
  0x2c   : > { %542 = vmatmul.mubr.f32.vlgmr.msra.gmra.mxu0 %v2705_v13  ;;  %2423 = vmatprep.subr.mxu0 %v2558_v34 }
  0x2d   : > { %2429 = vmatprep.mubr.msk.f32.mxu0 %vm2565_vm1, %v2558_v34  ;;  %2424 = vmatpush3.msk.msra.mxu0 %vm819_vm4, %v814_v24  ;;  %v1405_v24 = vld [vmem:[%s3783_s11 + $0x48] sm:$0xff] }
  0x2e   : > { %2425 = vmatprep.subr.mxu0 %v2558_v34 }
  0x2f   : > { %2426 = vmatpush3.msra.mxu0 %v813_v25 }
  0x30   : > { %2427 = vmatprep.subr.mxu0 %v2558_v34 }
  0x31   : > { %2428 = vmatpush3.msra.mxu0 %v812_v26 }
  0xec   : > { %v2286_v35 = vpop.f32.mrf.mxu0 }
  0xee   : > { %v2287_v36 = vpop.f32.mrf.mxu0 }
  0xef   : > { %v2288_v37 = vadd.f32 %v2287_v36, %v2286_v35 }
  0xf1   : > { %574 = vrot.lane.b32.xlu1 %v2288_v37, %s2559_s21  ;;  %578 = vrot.lane.b32.xlu0 %v2288_v37, %s2560_s22  ;;  %548 = vst.msk [vmem:[#allocation2] sm:$0xf] %vm547_vm0, %v2288_v37  ;;  %s2578_s21 = smov 110  }
  0xf5   : > { %562 = vrot.lane.b32.xlu1 %v2288_v37, %s2561_s23  ;;  %570 = vrot.lane.b32.xlu0 %v2288_v37, %s2562_s27  ;;  %s2569_s23 = smov 106  }
  0xf9   : > { %554 = vrot.lane.b32.xlu1 %v2288_v37, %s2563_s24  ;;  %566 = vrot.lane.b32.xlu0 %v2288_v37, %s2564_s28  ;;  %s2570_s28 = smov 108  }
  0xfd   : > { %550 = vrot.lane.b32.xlu1 %v2288_v37, %s2566_s29  ;;  %558 = vrot.lane.b32.xlu0 %v2288_v37, %s2567_s30  ;;  %s2571_s30 = smov 107  }
 0x101   : > { %591 = vperm.xlu0 %2546, %v588_v39  }
 0x163   : > { %v575_v40 = vpop.permute.xlu1 %574  ;;  %v579_v41 = vpop.permute.xlu0 %578 }
 0x164   : > { %577 = vst.msk [vmem:[#allocation2 + $0x1c] sm:$0xf] %vm547_vm0, %v575_v40  ;;  %581 = vst.msk [vmem:[#allocation2 + $0x20] sm:$0xf] %vm547_vm0, %v579_v41  ;;  %v943_v41 = vld [vmem:[%s3777_s5] sm:$0xff] }
 0x167   : > { %v563_v42 = vpop.permute.xlu1 %562  ;;  %v571_v43 = vpop.permute.xlu0 %570 }
 0x168   : > { %565 = vst.msk [vmem:[#allocation2 + $0x10] sm:$0xf] %vm547_vm0, %v563_v42  ;;  %573 = vst.msk [vmem:[#allocation2 + $0x18] sm:$0xf] %vm547_vm0, %v571_v43  ;;  %v1124_v42 = vld [vmem:[%s3782_s10 + $0x2f8] sm:$0xff] }
 0x169   : > { %2349 = vmatprep.subr.mxu0 %v1124_v42  ;;  %v1076_v43 = vld [vmem:[%s3782_s10 + $0x178] sm:$0xff] }
 0x16b   : > { %v555_v44 = vpop.permute.xlu1 %554  ;;  %v567_v45 = vpop.permute.xlu0 %566  ;;  %v587_v46 = vld [vmem:[#allocation2 + $0x20] sm:$0xf] }
 0x16c   : > { %557 = vst.msk [vmem:[#allocation2 + $0x8] sm:$0xf] %vm547_vm0, %v555_v44  ;;  %569 = vst.msk [vmem:[#allocation2 + $0x14] sm:$0xf] %vm547_vm0, %v567_v45  ;;  %2411 = vmatpush3.msk.msra.mxu1 %vm598_vm2, %v587_v46  ;;  %v1121_v44 = vld [vmem:[%s3782_s10 + $0x2e0] sm:$0xff]  ;;  %v1118_v46 = vld [vmem:[%s3782_s10 + $0x2c8] sm:$0xff] }
 0x16d   : > { %2412 = vmatprep.subr.mxu1 %v2558_v34  ;;  %v1073_v45 = vld [vmem:[%s3782_s10 + $0x160] sm:$0xff] }
 0x16f   : > { %v551_v47 = vpop.permute.xlu1 %550  ;;  %v559_v48 = vpop.permute.xlu0 %558  ;;  %v586_v49 = vld [vmem:[#allocation2 + $0x18] sm:$0xff] }
 0x170   : > { %553 = vst.msk [vmem:[#allocation2 + $0x4] sm:$0xf] %vm547_vm0, %v551_v47  ;;  %561 = vst.msk [vmem:[#allocation2 + $0xc] sm:$0xf] %vm547_vm0, %v559_v48  ;;  %2413 = vmatpush3.msra.mxu1 %v586_v49  ;;  %v1070_v47 = vld [vmem:[%s3782_s10 + $0x148] sm:$0xff]  ;;  %v1115_v48 = vld [vmem:[%s3782_s10 + $0x2b0] sm:$0xff] }
 0x171   : > { %2414 = vmatprep.subr.mxu1 %v2558_v34  ;;  %v1067_v49 = vld [vmem:[%s3782_s10 + $0x130] sm:$0xff]  ;;  %vm1372_vm0 = vcmask 744448  }
 0x173   : > { %v585_v50 = vld [vmem:[#allocation2 + $0x10] sm:$0xff] }
 0x174   : > { %2415 = vmatpush3.msra.mxu1 %v585_v50  ;;  %v1112_v50 = vld [vmem:[%s3782_s10 + $0x298] sm:$0xff] }
 0x175   : > { %2416 = vmatprep.subr.mxu1 %v2558_v34 }
 0x177   : > { %v584_v51 = vld [vmem:[#allocation2 + $0x8] sm:$0xff]  ;;  %v583_v54 = vld [vmem:[#allocation2] sm:$0xff] }
 0x178   : > { %2417 = vmatpush3.msra.mxu1 %v584_v51  ;;  %v1064_v51 = vld [vmem:[%s3782_s10 + $0x118] sm:$0xff] }
 0x179   : > { %2418 = vmatprep.subr.mxu1 %v2558_v34 }
 0x17a   : > { %2419 = vmatpush3.msra.mxu1 %v583_v54  ;;  %v1106_v54 = vld [vmem:[%s3782_s10 + $0x268] sm:$0xff] }
 0x17b   : > { %2421 = vmatmul.mubr.msk.f32.vlgmr.msra.gmra.mxu1 %vm594_vm3, %v582_v52  ;;  %2295 = vmatprep.subr.mxu1 %v706_v53  ;;  %v1109_v52 = vld [vmem:[%s3782_s10 + $0x280] sm:$0xff]  ;;  %vm1298_vm3 = vcmask 1031168  }
 0x17c   : > { %2296 = vmatpush3.msra.mxu1 %v690_v55  ;;  %771 = vmatprep.mubr.f32.mxu1 %v2712_v15  ;;  %v592_v27 = vpop.permute.xlu0 %591  ;;  %v1061_v53 = vld [vmem:[%s3782_s10 + $0x100] sm:$0xff]  ;;  %v1058_v55 = vld [vmem:[%s3782_s10 + $0xe8] sm:$0xff] }
 0x17d   : > { %2297 = vmatprep.subr.mxu1 %v705_v56  ;;  %v1103_v56 = vld [vmem:[%s3782_s10 + $0x250] sm:$0xff] }
 0x17e   : > { %2298 = vmatpush3.msra.mxu1 %v689_v57  ;;  %v1055_v57 = vld [vmem:[%s3782_s10 + $0xd0] sm:$0xff] }
 0x17f   : > { %2299 = vmatprep.subr.mxu1 %v704_v58  ;;  %v1100_v58 = vld [vmem:[%s3782_s10 + $0x238] sm:$0xff] }
 0x180   : > { %2300 = vmatpush3.msra.mxu1 %v688_v59  ;;  %v1052_v59 = vld [vmem:[%s3782_s10 + $0xb8] sm:$0xff] }
 0x181   : > { %2301 = vmatprep.subr.mxu1 %v703_v60  ;;  %v1097_v60 = vld [vmem:[%s3782_s10 + $0x220] sm:$0xff] }
 0x182   : > { %2302 = vmatpush3.msra.mxu1 %v687_v61  ;;  %v1049_v61 = vld [vmem:[%s3782_s10 + $0xa0] sm:$0xff] }
 0x183   : > { %2303 = vmatprep.subr.mxu1 %v702_v62  ;;  %v1094_v62 = vld [vmem:[%s3782_s10 + $0x208] sm:$0xff] }
 0x184   : > { %2304 = vmatpush3.msra.mxu1 %v686_v63  ;;  %v1046_v63 = vld [vmem:[%s3782_s10 + $0x88] sm:$0xff] }
 0x185   : > { %2305 = vmatprep.subr.mxu1 %v701_v0  ;;  %v1091_v0 = vld [vmem:[%s3782_s10 + $0x1f0] sm:$0xff] }
 0x186   : > { %2306 = vmatpush3.msra.mxu1 %v685_v1  ;;  %v1043_v1 = vld [vmem:[%s3782_s10 + $0x70] sm:$0xff] }
 0x187   : > { %2307 = vmatprep.subr.mxu1 %v700_v2  ;;  %v1088_v2 = vld [vmem:[%s3782_s10 + $0x1d8] sm:$0xff] }
 0x188   : > { %2308 = vmatpush3.msra.mxu1 %v684_v3  ;;  %v1040_v3 = vld [vmem:[%s3782_s10 + $0x58] sm:$0xff] }
 0x189   : > { %2309 = vmatprep.subr.mxu1 %v699_v4  ;;  %v1085_v4 = vld [vmem:[%s3782_s10 + $0x1c0] sm:$0xff] }
 0x18a   : > { %2310 = vmatpush3.msra.mxu1 %v683_v5  ;;  %v1037_v5 = vld [vmem:[%s3782_s10 + $0x40] sm:$0xff] }
 0x18b   : > { %2311 = vmatprep.subr.mxu1 %v698_v6  ;;  %v1082_v6 = vld [vmem:[%s3782_s10 + $0x1a8] sm:$0xff] }
 0x18c   : > { %2312 = vmatpush3.msra.mxu1 %v682_v7  ;;  %v1034_v7 = vld [vmem:[%s3782_s10 + $0x28] sm:$0xff] }
 0x18d   : > { %2313 = vmatprep.subr.mxu1 %v697_v8  ;;  %v1079_v8 = vld [vmem:[%s3782_s10 + $0x190] sm:$0xff] }
 0x18e   : > { %2314 = vmatpush3.msra.mxu1 %v681_v9  ;;  %v1031_v9 = vld [vmem:[%s3782_s10 + $0x10] sm:$0xff] }
 0x18f   : > { %2315 = vmatprep.subr.mxu1 %v696_v10  ;;  %v1424_v10 = vld [vmem:[%s3783_s11 + $0xe0] sm:$0x3f] }
 0x190   : > { %2316 = vmatpush3.msra.mxu1 %v680_v11  ;;  %v1423_v11 = vld [vmem:[%s3783_s11 + $0xd8] sm:$0x3f] }
 0x191   : > { %2317 = vmatprep.subr.mxu1 %v695_v12  ;;  %v1421_v12 = vld [vmem:[%s3783_s11 + $0xc8] sm:$0xff] }
 0x192   : > { %2318 = vmatpush3.msra.mxu1 %v679_v14  ;;  %v1418_v14 = vld [vmem:[%s3783_s11 + $0xb0] sm:$0xff] }
 0x193   : > { %2319 = vmatprep.subr.mxu1 %v694_v16  ;;  %v1417_v16 = vld [vmem:[%s3783_s11 + $0xa8] sm:$0xff] }
 0x194   : > { %2320 = vmatpush3.msra.mxu1 %v678_v17  ;;  %v1415_v17 = vld [vmem:[%s3783_s11 + $0x98] sm:$0xff] }
 0x195   : > { %2321 = vmatprep.subr.mxu1 %v693_v18  ;;  %v1414_v18 = vld [vmem:[%s3783_s11 + $0x90] sm:$0xff] }
 0x196   : > { %2322 = vmatpush3.msra.mxu1 %v677_v19  ;;  %v1412_v19 = vld [vmem:[%s3783_s11 + $0x80] sm:$0xff] }
 0x197   : > { %2323 = vmatprep.subr.mxu1 %v692_v20  ;;  %v1411_v20 = vld [vmem:[%s3783_s11 + $0x78] sm:$0xff] }
 0x198   : > { %2324 = vmatpush3.msra.mxu1 %v676_v21  ;;  %v1409_v21 = vld [vmem:[%s3783_s11 + $0x68] sm:$0xff] }
 0x199   : > { %2325 = vmatprep.subr.mxu1 %v691_v22  ;;  %v1408_v22 = vld [vmem:[%s3783_s11 + $0x60] sm:$0xff] }
 0x19a   : > { %2326 = vmatpush3.msra.mxu1 %v675_v23  ;;  %v1406_v23 = vld [vmem:[%s3783_s11 + $0x50] sm:$0xff] }
 0x19b   : > { %772 = vmatmul.mubr.f32.vlgmr.msra.gmra.mxu1 %v2705_v13  ;;  %2432 = vmatprep.subr.mxu1 %v2558_v34 }
 0x19c   : > { %2460 = vmatprep.mubr.msk.f32.mxu1 %vm2565_vm1, %v2558_v34 }
 0x23b   : > { %v668_v28 = vpop.f32.mrf.mxu1 }
 0x23c   : > { %v669_v29 = vadd.f32 %v668_v28, %v592_v27 }
 0x23d   : > { %v2422_v30 = vpop.f32.mrf.mxu1 }
 0x23e   : > { %vm672_vm5 = vcmp.ge.f32.partialorder %v669_v29, 0.0  ;;  %v673_v31 = vmul.f32 0.2, %v669_v29 }
 0x240   : > { %v674_v32 = vsel %vm672_vm5, %v669_v29, %v673_v31  ;;  %vm1282_vm5 = vcmask 1039360  }
 0x241   : > { %2430 = vmatmul.mubr.msk.f32.vlgmr.msra.gmra.mxu0 %vm815_vm6, %v674_v32 }
 0x242   : > { %1260 = vmatprep.mubr.f32.mxu0 %v2712_v15  ;;  %2350 = vmatpush3.msra.mxu0 %v1076_v43 }
 0x243   : > { %2351 = vmatprep.subr.mxu0 %v1121_v44 }
 0x244   : > { %2352 = vmatpush3.msra.mxu0 %v1073_v45 }
 0x245   : > { %2353 = vmatprep.subr.mxu0 %v1118_v46 }
 0x246   : > { %2354 = vmatpush3.msra.mxu0 %v1070_v47 }
 0x247   : > { %2355 = vmatprep.subr.mxu0 %v1115_v48 }
 0x248   : > { %2356 = vmatpush3.msra.mxu0 %v1067_v49 }
 0x249   : > { %2357 = vmatprep.subr.mxu0 %v1112_v50 }
 0x24a   : > { %2358 = vmatpush3.msra.mxu0 %v1064_v51 }
 0x24b   : > { %2359 = vmatprep.subr.mxu0 %v1109_v52 }
 0x24c   : > { %2360 = vmatpush3.msra.mxu0 %v1061_v53  ;;  %v928_v53 = vld [vmem:[%s3776_s4] sm:$0xff] }
 0x24d   : > { %2361 = vmatprep.subr.mxu0 %v1106_v54  ;;  %v1075_v54 = vld [vmem:[%s3782_s10 + $0x170] sm:$0xff] }
 0x24e   : > { %2362 = vmatpush3.msra.mxu0 %v1058_v55 }
 0x24f   : > { %2363 = vmatprep.subr.mxu0 %v1103_v56  ;;  %v1074_v56 = vld [vmem:[%s3782_s10 + $0x168] sm:$0xff] }
 0x250   : > { %2364 = vmatpush3.msra.mxu0 %v1055_v57  ;;  %v1072_v57 = vld [vmem:[%s3782_s10 + $0x158] sm:$0xff] }
 0x251   : > { %2365 = vmatprep.subr.mxu0 %v1100_v58  ;;  %v1071_v58 = vld [vmem:[%s3782_s10 + $0x150] sm:$0xff] }
 0x252   : > { %2366 = vmatpush3.msra.mxu0 %v1052_v59  ;;  %v1069_v59 = vld [vmem:[%s3782_s10 + $0x140] sm:$0xff] }
 0x253   : > { %2367 = vmatprep.subr.mxu0 %v1097_v60  ;;  %v1068_v60 = vld [vmem:[%s3782_s10 + $0x138] sm:$0xff] }
 0x254   : > { %2368 = vmatpush3.msra.mxu0 %v1049_v61  ;;  %v1066_v61 = vld [vmem:[%s3782_s10 + $0x128] sm:$0xff] }
 0x255   : > { %2369 = vmatprep.subr.mxu0 %v1094_v62  ;;  %v1065_v62 = vld [vmem:[%s3782_s10 + $0x120] sm:$0xff] }
 0x256   : > { %2370 = vmatpush3.msra.mxu0 %v1046_v63  ;;  %v1062_v63 = vld [vmem:[%s3782_s10 + $0x108] sm:$0xff] }
 0x257   : > { %2371 = vmatprep.subr.mxu0 %v1091_v0  ;;  %v1060_v0 = vld [vmem:[%s3782_s10 + $0xf8] sm:$0xff] }
 0x258   : > { %2372 = vmatpush3.msra.mxu0 %v1043_v1  ;;  %v1059_v1 = vld [vmem:[%s3782_s10 + $0xf0] sm:$0xff] }
 0x259   : > { %2373 = vmatprep.subr.mxu0 %v1088_v2  ;;  %v1057_v2 = vld [vmem:[%s3782_s10 + $0xe0] sm:$0xff] }
 0x25a   : > { %2374 = vmatpush3.msra.mxu0 %v1040_v3  ;;  %v1056_v3 = vld [vmem:[%s3782_s10 + $0xd8] sm:$0xff] }
 0x25b   : > { %v2327_v33 = vpop.f32.mrf.mxu1  ;;  %2375 = vmatprep.subr.mxu0 %v1085_v4  ;;  %v1054_v4 = vld [vmem:[%s3782_s10 + $0xc8] sm:$0xff] }
 0x25c   : > { %2376 = vmatpush3.msra.mxu0 %v1037_v5  ;;  %v1053_v5 = vld [vmem:[%s3782_s10 + $0xc0] sm:$0xff] }
 0x25d   : > { %v2328_v35 = vpop.f32.mrf.mxu1  ;;  %2377 = vmatprep.subr.mxu0 %v1082_v6  ;;  %v1051_v6 = vld [vmem:[%s3782_s10 + $0xb0] sm:$0xff] }
 0x25e   : > { %v2329_v36 = vadd.f32 %v2328_v35, %v2327_v33  ;;  %2378 = vmatpush3.msra.mxu0 %v1034_v7  ;;  %v1050_v7 = vld [vmem:[%s3782_s10 + $0xa8] sm:$0xff] }
 0x25f   : > { %2379 = vmatprep.subr.mxu0 %v1079_v8  ;;  %v1048_v8 = vld [vmem:[%s3782_s10 + $0x98] sm:$0xff] }
 0x260   : > { %808 = vrot.lane.b32.xlu0 %v2329_v36, %s2569_s23  ;;  %800 = vrot.lane.b32.xlu1 %v2329_v36, %s2570_s28  ;;  %778 = vst.msk [vmem:[#allocation3] sm:$0xf] %vm777_vm7, %v2329_v36 }
 0x261   : > { %2380 = vmatpush3.msra.mxu0 %v1031_v9  ;;  %v1047_v9 = vld [vmem:[%s3782_s10 + $0x90] sm:$0xff] }
 0x262   : > { %1261 = vmatmul.mubr.f32.vlgmr.msra.gmra.mxu0 %v2705_v13  ;;  %2237 = vmatprep.subr.msk.mxu0 %vm819_vm4, %v1424_v10  ;;  %v1420_v13 = vld [vmem:[%s3783_s11 + $0xc0] sm:$0xff] }
 0x263   : > { %1502 = vmatprep.mubr.f32.mxu0 %v2558_v34  ;;  %2238 = vmatpush1.msk.msra.mxu0 %vm819_vm4, %v1423_v11  ;;  %v1045_v10 = vld [vmem:[%s3782_s10 + $0x80] sm:$0xff]  ;;  %v1044_v11 = vld [vmem:[%s3782_s10 + $0x78] sm:$0xff] }
 0x264   : > { %1452 = vmatprep.subr.mxu0 %v1421_v12  ;;  %v1042_v12 = vld [vmem:[%s3782_s10 + $0x68] sm:$0xff] }
 0x265   : > { %1453 = vmatpush1.msra.mxu0 %v1420_v13  ;;  %v1041_v13 = vld [vmem:[%s3782_s10 + $0x60] sm:$0xff] }
 0x266   : > { %1454 = vmatprep.subr.mxu0 %v1418_v14  ;;  %v1039_v14 = vld [vmem:[%s3782_s10 + $0x50] sm:$0xff] }
 0x267   : > { %1455 = vmatpush1.msra.mxu0 %v1417_v16  ;;  %v1038_v16 = vld [vmem:[%s3782_s10 + $0x48] sm:$0xff] }
 0x268   : > { %1456 = vmatprep.subr.mxu0 %v1415_v17  ;;  %v1036_v17 = vld [vmem:[%s3782_s10 + $0x38] sm:$0xff] }
 0x269   : > { %1457 = vmatpush1.msra.mxu0 %v1414_v18  ;;  %v1035_v18 = vld [vmem:[%s3782_s10 + $0x30] sm:$0xff] }
 0x26a   : > { %1458 = vmatprep.subr.mxu0 %v1412_v19  ;;  %v1033_v19 = vld [vmem:[%s3782_s10 + $0x20] sm:$0xff] }
 0x26b   : > { %1459 = vmatpush1.msra.mxu0 %v1411_v20  ;;  %v1032_v20 = vld [vmem:[%s3782_s10 + $0x18] sm:$0xff] }
 0x26c   : > { %1460 = vmatprep.subr.mxu0 %v1409_v21  ;;  %v1030_v21 = vld [vmem:[%s3782_s10 + $0x8] sm:$0xff] }
 0x26d   : > { %1461 = vmatpush1.msra.mxu0 %v1408_v22  ;;  %v1029_v22 = vld [vmem:[%s3782_s10] sm:$0xff] }
 0x26e   : > { %1462 = vmatprep.subr.mxu0 %v1406_v23  ;;  %v1123_v23 = vld [vmem:[%s3782_s10 + $0x2f0] sm:$0xff] }
 0x26f   : > { %1463 = vmatpush1.msra.mxu0 %v1405_v24  ;;  %v1122_v24 = vld [vmem:[%s3782_s10 + $0x2e8] sm:$0xff] }
 0x2d2   : > { %v809_v37 = vpop.permute.xlu0 %808  ;;  %v801_v38 = vpop.permute.xlu1 %800 }
 0x2d3   : > { %811 = vst.msk [vmem:[#allocation3 + $0x20] sm:$0xf] %vm777_vm7, %v809_v37  ;;  %803 = vst.msk [vmem:[#allocation3 + $0x18] sm:$0xf] %vm777_vm7, %v801_v38 }
 0x301   : > { %v889_v39 = vpop.f32.mrf.mxu0 }
 0x302   : > { %894 = vst.msk [vmem:[#allocation3 + $0x24] sm:$0xff] %vm893_vm8, %v889_v39  ;;  %924 = vrot.lane.b32.xlu1 %v889_v39, %s2569_s23  ;;  %916 = vrot.lane.b32.xlu0 %v889_v39, %s2570_s28 }
 0x303   : > { %v2431_v40 = vpop.f32.mrf.mxu0 }
 0x306   : > { %920 = vrot.lane.b32.xlu1 %v889_v39, %s2571_s30  ;;  %908 = vrot.lane.b32.xlu0 %v889_v39, %s2572_s14 }
 0x309   : > { %v933_v49 = vld [vmem:[#allocation3 + $0x20] sm:$0xff] }
 0x30a   : > { %912 = vrot.lane.b32.xlu1 %v889_v39, %s2562_s27  ;;  %900 = vrot.lane.b32.xlu0 %v889_v39, %s2563_s24 }
 0x30e   : > { %904 = vrot.lane.b32.xlu1 %v889_v39, %s2573_s15  ;;  %804 = vrot.lane.b32.xlu0 %v2329_v36, %s2571_s30 }
 0x312   : > { %896 = vrot.lane.b32.xlu1 %v889_v39, %s2566_s29  ;;  %796 = vrot.lane.b32.xlu0 %v2329_v36, %s2562_s27 }
 0x316   : > { %792 = vrot.lane.b32.xlu1 %v2329_v36, %s2572_s14  ;;  %788 = vrot.lane.b32.xlu0 %v2329_v36, %s2573_s15 }
 0x31a   : > { %784 = vrot.lane.b32.xlu1 %v2329_v36, %s2563_s24  ;;  %946 = vperm.xlu0 %2546, %v943_v41  }
 0x31e   : > { %780 = vrot.lane.b32.xlu1 %v2329_v36, %s2566_s29 }
 0x374   : > { %v925_v25 = vpop.permute.xlu1 %924  ;;  %v917_v26 = vpop.permute.xlu0 %916 }
 0x375   : > { %927 = vst.msk [vmem:[#allocation3 + $0x64] sm:$0xff] %vm893_vm8, %v925_v25  ;;  %919 = vst.msk [vmem:[#allocation3 + $0x54] sm:$0xff] %vm893_vm8, %v917_v26  ;;  %v1120_v25 = vld [vmem:[%s3782_s10 + $0x2d8] sm:$0xff]  ;;  %v1119_v26 = vld [vmem:[%s3782_s10 + $0x2d0] sm:$0xff] }
 0x378   : > { %v921_v27 = vpop.permute.xlu1 %920  ;;  %v909_v28 = vpop.permute.xlu0 %908 }
 0x379   : > { %923 = vst.msk [vmem:[#allocation3 + $0x5c] sm:$0xff] %vm893_vm8, %v921_v27  ;;  %911 = vst.msk [vmem:[#allocation3 + $0x44] sm:$0xff] %vm893_vm8, %v909_v28  ;;  %v1117_v27 = vld [vmem:[%s3782_s10 + $0x2c0] sm:$0xff]  ;;  %v1116_v28 = vld [vmem:[%s3782_s10 + $0x2b8] sm:$0xff] }
 0x37c   : > { %v913_v29 = vpop.permute.xlu1 %912  ;;  %v901_v30 = vpop.permute.xlu0 %900  ;;  %v942_v31 = vld [vmem:[#allocation3 + $0x68] sm:$0xf] }
 0x37d   : > { %915 = vst.msk [vmem:[#allocation3 + $0x4c] sm:$0xff] %vm893_vm8, %v913_v29  ;;  %903 = vst.msk [vmem:[#allocation3 + $0x34] sm:$0xff] %vm893_vm8, %v901_v30  ;;  %2433 = vmatpush3.msk.msra.mxu1 %vm598_vm2, %v942_v31  ;;  %v1114_v29 = vld [vmem:[%s3782_s10 + $0x2a8] sm:$0xff]  ;;  %v1113_v30 = vld [vmem:[%s3782_s10 + $0x2a0] sm:$0xff] }
 0x37e   : > { %2434 = vmatprep.subr.mxu1 %v2558_v34  ;;  %v1111_v31 = vld [vmem:[%s3782_s10 + $0x290] sm:$0xff] }
 0x380   : > { %v905_v32 = vpop.permute.xlu1 %904  ;;  %v805_v33 = vpop.permute.xlu0 %804  ;;  %v941_v35 = vld [vmem:[#allocation3 + $0x60] sm:$0xff]  ;;  %v940_v36 = vld [vmem:[#allocation3 + $0x58] sm:$0xff] }
 0x381   : > { %907 = vst.msk [vmem:[#allocation3 + $0x3c] sm:$0xff] %vm893_vm8, %v905_v32  ;;  %2435 = vmatpush3.msra.mxu1 %v941_v35  ;;  %v1110_v32 = vld [vmem:[%s3782_s10 + $0x288] sm:$0xff]  ;;  %v1107_v35 = vld [vmem:[%s3782_s10 + $0x270] sm:$0xff] }
 0x382   : > { %807 = vst.msk [vmem:[#allocation3 + $0x1c] sm:$0xf] %vm777_vm7, %v805_v33  ;;  %2436 = vmatprep.subr.mxu1 %v2558_v34  ;;  %v1108_v33 = vld [vmem:[%s3782_s10 + $0x278] sm:$0xff] }
 0x383   : > { %2437 = vmatpush3.msra.mxu1 %v940_v36  ;;  %v1105_v36 = vld [vmem:[%s3782_s10 + $0x260] sm:$0xff] }
 0x384   : > { %v897_v37 = vpop.permute.xlu1 %896  ;;  %2438 = vmatprep.subr.mxu1 %v2558_v34  ;;  %v797_v38 = vpop.permute.xlu0 %796  ;;  %v939_v39 = vld [vmem:[#allocation3 + $0x50] sm:$0xff]  ;;  %v938_v40 = vld [vmem:[#allocation3 + $0x48] sm:$0xff] }
 0x385   : > { %899 = vst.msk [vmem:[#allocation3 + $0x2c] sm:$0xff] %vm893_vm8, %v897_v37  ;;  %2439 = vmatpush3.msra.mxu1 %v939_v39  ;;  %v1104_v37 = vld [vmem:[%s3782_s10 + $0x258] sm:$0xff]  ;;  %v1101_v39 = vld [vmem:[%s3782_s10 + $0x240] sm:$0xff] }
 0x386   : > { %799 = vst.msk [vmem:[#allocation3 + $0x14] sm:$0xf] %vm777_vm7, %v797_v38  ;;  %2440 = vmatprep.subr.mxu1 %v2558_v34  ;;  %v1102_v38 = vld [vmem:[%s3782_s10 + $0x248] sm:$0xff] }
 0x387   : > { %2441 = vmatpush3.msra.mxu1 %v938_v40  ;;  %v1099_v40 = vld [vmem:[%s3782_s10 + $0x230] sm:$0xff] }
 0x388   : > { %v793_v41 = vpop.permute.xlu1 %792  ;;  %2442 = vmatprep.subr.mxu1 %v2558_v34  ;;  %v789_v42 = vpop.permute.xlu0 %788  ;;  %v937_v43 = vld [vmem:[#allocation3 + $0x40] sm:$0xff]  ;;  %v936_v44 = vld [vmem:[#allocation3 + $0x38] sm:$0xff] }
 0x389   : > { %795 = vst.msk [vmem:[#allocation3 + $0x10] sm:$0xf] %vm777_vm7, %v793_v41  ;;  %791 = vst.msk [vmem:[#allocation3 + $0xc] sm:$0xf] %vm777_vm7, %v789_v42  ;;  %2443 = vmatpush3.msra.mxu1 %v937_v43  ;;  %v932_v50 = vld [vmem:[#allocation3 + $0x18] sm:$0xff]  ;;  %v1098_v41 = vld [vmem:[%s3782_s10 + $0x228] sm:$0xff] }
 0x38a   : > { %2444 = vmatprep.subr.mxu1 %v2558_v34  ;;  %v1096_v42 = vld [vmem:[%s3782_s10 + $0x218] sm:$0xff]  ;;  %v1095_v43 = vld [vmem:[%s3782_s10 + $0x210] sm:$0xff] }
 0x38b   : > { %2445 = vmatpush3.msra.mxu1 %v936_v44  ;;  %v1093_v44 = vld [vmem:[%s3782_s10 + $0x200] sm:$0xff] }
 0x38c   : > { %v785_v45 = vpop.permute.xlu1 %784  ;;  %2446 = vmatprep.subr.mxu1 %v2558_v34  ;;  %v935_v46 = vld [vmem:[#allocation3 + $0x30] sm:$0xff]  ;;  %v934_v47 = vld [vmem:[#allocation3 + $0x28] sm:$0xff] }
 0x38d   : > { %787 = vst.msk [vmem:[#allocation3 + $0x8] sm:$0xf] %vm777_vm7, %v785_v45  ;;  %2447 = vmatpush3.msra.mxu1 %v935_v46  ;;  %v1092_v45 = vld [vmem:[%s3782_s10 + $0x1f8] sm:$0xff]  ;;  %v1090_v46 = vld [vmem:[%s3782_s10 + $0x1e8] sm:$0xff] }
 0x38e   : > { %2448 = vmatprep.subr.mxu1 %v2558_v34 }
 0x38f   : > { %2449 = vmatpush3.msra.mxu1 %v934_v47  ;;  %v1089_v47 = vld [vmem:[%s3782_s10 + $0x1e0] sm:$0xff] }
 0x390   : > { %v781_v48 = vpop.permute.xlu1 %780  ;;  %2450 = vmatprep.subr.mxu1 %v2558_v34  ;;  %v931_v51 = vld [vmem:[#allocation3 + $0x10] sm:$0xff] }
 0x391   : > { %783 = vst.msk [vmem:[#allocation3 + $0x4] sm:$0xf] %vm777_vm7, %v781_v48  ;;  %2451 = vmatpush3.msra.mxu1 %v933_v49  ;;  %v1087_v48 = vld [vmem:[%s3782_s10 + $0x1d0] sm:$0xff]  ;;  %v1086_v49 = vld [vmem:[%s3782_s10 + $0x1c8] sm:$0xff] }
 0x392   : > { %2452 = vmatprep.subr.mxu1 %v2558_v34 }
 0x393   : > { %2453 = vmatpush3.msra.mxu1 %v932_v50  ;;  %v1084_v50 = vld [vmem:[%s3782_s10 + $0x1b8] sm:$0xff] }
 0x394   : > { %2454 = vmatprep.subr.mxu1 %v2558_v34  ;;  %v930_v52 = vld [vmem:[#allocation3 + $0x8] sm:$0xff] }
 0x395   : > { %2455 = vmatpush3.msra.mxu1 %v931_v51  ;;  %v1083_v51 = vld [vmem:[%s3782_s10 + $0x1b0] sm:$0xff] }
 0x396   : > { %2456 = vmatprep.subr.mxu1 %v2558_v34 }
 0x397   : > { %2457 = vmatpush3.msra.mxu1 %v930_v52  ;;  %v1081_v52 = vld [vmem:[%s3782_s10 + $0x1a0] sm:$0xff] }
 0x398   : > { %2458 = vmatprep.subr.mxu1 %v2558_v34  ;;  %v929_v55 = vld [vmem:[#allocation3] sm:$0xff] }
 0x399   : > { %2459 = vmatpush3.msra.mxu1 %v929_v55  ;;  %v1077_v55 = vld [vmem:[%s3782_s10 + $0x180] sm:$0xff] }
 0x39a   : > { %2461 = vmatmul.mubr.msk.f32.vlgmr.msra.gmra.mxu1 %vm949_vm9, %v928_v53  ;;  %1125 = vmatprep.subr.mxu1 %v1075_v54  ;;  %v1080_v53 = vld [vmem:[%s3782_s10 + $0x198] sm:$0xff]  ;;  %v1078_v54 = vld [vmem:[%s3782_s10 + $0x188] sm:$0xff] }
 0x39b   : > { %1126 = vmatpush1.msra.mxu1 %v1074_v56  ;;  %1189 = vmatprep.mubr.f32.mxu1 %v2712_v15  ;;  %v1063_v15 = vld [vmem:[%s3782_s10 + $0x110] sm:$0xff]  ;;  %v1425_v56 = vld [vmem:[%s3783_s11 + $0xe8] sm:$0x3f] }
 0x39c   : > { %1127 = vmatprep.subr.mxu1 %v1072_v57  ;;  %v1403_v57 = vld [vmem:[%s3783_s11 + $0x38] sm:$0xff] }
 0x39d   : > { %1128 = vmatpush1.msra.mxu1 %v1071_v58  ;;  %v2549_v58 = vld [vmem:[%s2693_s18] sm:$0xff]  ;;  %1464 = vmatprep.subr.mxu0 %v1403_v57  ;;  %s2576_s18 = smov 91  }
 0x39e   : > { %1129 = vmatprep.subr.mxu1 %v1069_v59  ;;  %v1422_v59 = vld [vmem:[%s3783_s11 + $0xd0] sm:$0xff]  ;;  %v1773_v57 = vld [vmem:[%s3781_s9] sm:$0x3f] }
 0x39f   : > { %1130 = vmatpush1.msra.mxu1 %v1068_v60  ;;  %v1402_v60 = vld [vmem:[%s3783_s11 + $0x30] sm:$0xff] }
 0x3a0   : > { %1131 = vmatprep.subr.mxu1 %v1066_v61  ;;  %v1400_v61 = vld [vmem:[%s3783_s11 + $0x20] sm:$0xff]  ;;  %1465 = vmatpush1.msra.mxu0 %v1402_v60 }
 0x3a1   : > { %1132 = vmatpush1.msra.mxu1 %v1065_v62  ;;  %v1419_v62 = vld [vmem:[%s3783_s11 + $0xb8] sm:$0xff]  ;;  %1466 = vmatprep.subr.mxu0 %v1400_v61 }
 0x3a2   : > { %1133 = vmatprep.subr.mxu1 %v1063_v15  ;;  %v1399_v15 = vld [vmem:[%s3783_s11 + $0x18] sm:$0xff] }
 0x3a3   : > { %1134 = vmatpush1.msra.mxu1 %v1062_v63  ;;  %v1397_v63 = vld [vmem:[%s3783_s11 + $0x8] sm:$0xff]  ;;  %1467 = vmatpush1.msra.mxu0 %v1399_v15 }
 0x3a4   : > { %1135 = vmatprep.subr.mxu1 %v1060_v0  ;;  %v1416_v0 = vld [vmem:[%s3783_s11 + $0xa0] sm:$0xff]  ;;  %1468 = vmatprep.subr.mxu0 %v1397_v63 }
 0x3a5   : > { %1136 = vmatpush1.msra.mxu1 %v1059_v1  ;;  %v1396_v1 = vld [vmem:[%s3783_s11] sm:$0xff] }
 0x3a6   : > { %1137 = vmatprep.subr.mxu1 %v1057_v2  ;;  %v1413_v2 = vld [vmem:[%s3783_s11 + $0x88] sm:$0xff]  ;;  %1469 = vmatpush1.msra.mxu0 %v1396_v1 }
 0x3a7   : > { %1138 = vmatpush1.msra.mxu1 %v1056_v3  ;;  %v1410_v3 = vld [vmem:[%s3783_s11 + $0x70] sm:$0xff] }
 0x3a8   : > { %1139 = vmatprep.subr.mxu1 %v1054_v4  ;;  %v1407_v4 = vld [vmem:[%s3783_s11 + $0x58] sm:$0xff] }
 0x3a9   : > { %1140 = vmatpush1.msra.mxu1 %v1053_v5  ;;  %v1404_v5 = vld [vmem:[%s3783_s11 + $0x40] sm:$0xff] }
 0x3aa   : > { %1141 = vmatprep.subr.mxu1 %v1051_v6  ;;  %v1401_v6 = vld [vmem:[%s3783_s11 + $0x28] sm:$0xff] }
 0x3ab   : > { %1142 = vmatpush1.msra.mxu1 %v1050_v7  ;;  %v1398_v7 = vld [vmem:[%s3783_s11 + $0x10] sm:$0xff] }
 0x3ac   : > { %1143 = vmatprep.subr.mxu1 %v1048_v8  ;;  %v2381_v8 = vpop.f32.mrf.mxu0 }
 0x3ad   : > { %1144 = vmatpush1.msra.mxu1 %v1047_v9 }
 0x3ae   : > { %1145 = vmatprep.subr.mxu1 %v1045_v10  ;;  %v2382_v9 = vpop.f32.mrf.mxu0 }
 0x3af   : > { %1146 = vmatpush1.msra.mxu1 %v1044_v11  ;;  %v3358_v10 = vadd.f32 %v2382_v9, %v2381_v8 }
 0x3b0   : > { %1147 = vmatprep.subr.mxu1 %v1042_v12  ;;  %v947_v12 = vpop.permute.xlu0 %946 }
 0x3b1   : > { %1148 = vmatpush1.msra.mxu1 %v1041_v13  ;;  %1269 = vst.msk [vmem:[#allocation4 + $0x10] sm:$0xf] %vm1268_vm10, %v3358_v10  ;;  %1355 = vrot.lane.b32.xlu1 %v3358_v10, %s2574_s17  ;;  %v3367_v11 = vrot.slane %v3358_v10, 4 }
 0x3b2   : > { %1149 = vmatprep.subr.mxu1 %v1039_v14  ;;  %1385 = vrot.lane.b32.xlu0 %v3358_v10, %s2577_s20 }
 0x3b3   : > { %1150 = vmatpush1.msra.mxu1 %v1038_v16 }
 0x3b4   : > { %1151 = vmatprep.subr.mxu1 %v1036_v17 }
 0x3b5   : > { %1152 = vmatpush1.msra.mxu1 %v1035_v18  ;;  %1326 = vrot.lane.b32.xlu1 %v3358_v10, %s2575_s19 }
 0x3b6   : > { %1153 = vmatprep.subr.mxu1 %v1033_v19 }
 0x3b7   : > { %1154 = vmatpush1.msra.mxu1 %v1032_v20 }
 0x3b8   : > { %1155 = vmatprep.subr.mxu1 %v1030_v21 }
 0x3b9   : > { %1156 = vmatpush1.msra.mxu1 %v1029_v22  ;;  %1370 = vrot.lane.b32.xlu1 %v3367_v11, %s2576_s18 }
 0x3ba   : > { %1157 = vmatprep.subr.mxu1 %v1123_v23 }
 0x3bb   : > { %1158 = vmatpush2.msra.mxu1 %v1122_v24 }
 0x3bc   : > { %1159 = vmatprep.subr.mxu1 %v1120_v25 }
 0x3bd   : > { %1160 = vmatpush2.msra.mxu1 %v1119_v26  ;;  %1341 = vrot.lane.b32.xlu1 %v3367_v11, %s2570_s28 }
 0x3be   : > { %1161 = vmatprep.subr.mxu1 %v1117_v27 }
 0x3bf   : > { %1162 = vmatpush2.msra.mxu1 %v1116_v28 }
 0x3c0   : > { %1163 = vmatprep.subr.mxu1 %v1114_v29 }
 0x3c1   : > { %1164 = vmatpush2.msra.mxu1 %v1113_v30 }
 0x3c2   : > { %1165 = vmatprep.subr.mxu1 %v1111_v31 }
 0x3c3   : > { %1166 = vmatpush2.msra.mxu1 %v1110_v32 }
 0x3c4   : > { %1167 = vmatprep.subr.mxu1 %v1108_v33 }
 0x3c5   : > { %1168 = vmatpush2.msra.mxu1 %v1107_v35 }
 0x3c6   : > { %1169 = vmatprep.subr.mxu1 %v1105_v36 }
 0x3c7   : > { %1170 = vmatpush2.msra.mxu1 %v1104_v37 }
 0x3c8   : > { %1171 = vmatprep.subr.mxu1 %v1102_v38 }
 0x3c9   : > { %1172 = vmatpush2.msra.mxu1 %v1101_v39 }
 0x3ca   : > { %1173 = vmatprep.subr.mxu1 %v1099_v40 }
 0x3cb   : > { %1174 = vmatpush2.msra.mxu1 %v1098_v41 }
 0x3cc   : > { %1175 = vmatprep.subr.mxu1 %v1096_v42 }
 0x3cd   : > { %1176 = vmatpush2.msra.mxu1 %v1095_v43 }
 0x3ce   : > { %1177 = vmatprep.subr.mxu1 %v1093_v44 }
 0x3cf   : > { %1178 = vmatpush2.msra.mxu1 %v1092_v45 }
 0x3d0   : > { %1179 = vmatprep.subr.mxu1 %v1090_v46 }
 0x3d1   : > { %1180 = vmatpush2.msra.mxu1 %v1089_v47 }
 0x3d2   : > { %1181 = vmatprep.subr.mxu1 %v1087_v48 }
 0x3d3   : > { %1182 = vmatpush2.msra.mxu1 %v1086_v49 }
 0x3d4   : > { %1183 = vmatprep.subr.mxu1 %v1084_v50 }
 0x3d5   : > { %1184 = vmatpush2.msra.mxu1 %v1083_v51 }
 0x3d6   : > { %1185 = vmatprep.subr.mxu1 %v1081_v52 }
 0x3d7   : > { %1186 = vmatpush2.msra.mxu1 %v1080_v53 }
 0x3d8   : > { %1187 = vmatprep.subr.mxu1 %v1078_v54 }
 0x3d9   : > { %1188 = vmatpush2.msra.mxu1 %v1077_v55 }
 0x3da   : > { %1190 = vmatmul.mubr.f32.vlgmr.msra.gmra.mxu1 %v2549_v58  ;;  %2463 = vmatprep.subr.mxu1 %v2558_v34 }
 0x3db   : > { %2464 = vmatpush3.msk.msra.mxu1 %vm819_vm4, %v1425_v56  ;;  %2483 = vmatprep.mubr.msk.f32.mxu1 %vm2565_vm1, %v2558_v34 }
 0x3dc   : > { %2465 = vmatprep.subr.mxu1 %v2558_v34 }
 0x3dd   : > { %2466 = vmatpush3.msra.mxu1 %v1422_v59 }
 0x3de   : > { %2467 = vmatprep.subr.mxu1 %v2558_v34 }
 0x3df   : > { %2468 = vmatpush3.msra.mxu1 %v1419_v62 }
 0x3e0   : > { %2469 = vmatprep.subr.mxu1 %v2558_v34 }
 0x3e1   : > { %2470 = vmatpush3.msra.mxu1 %v1416_v0 }
 0x3e2   : > { %2471 = vmatprep.subr.mxu1 %v2558_v34 }
 0x3e3   : > { %2472 = vmatpush3.msra.mxu1 %v1413_v2 }
 0x3e4   : > { %2473 = vmatprep.subr.mxu1 %v2558_v34 }
 0x3e5   : > { %2474 = vmatpush3.msra.mxu1 %v1410_v3 }
 0x3e6   : > { %2475 = vmatprep.subr.mxu1 %v2558_v34 }
 0x3e7   : > { %2476 = vmatpush3.msra.mxu1 %v1407_v4 }
 0x3e8   : > { %2477 = vmatprep.subr.mxu1 %v2558_v34 }
 0x3e9   : > { %2478 = vmatpush3.msra.mxu1 %v1404_v5 }
 0x3ea   : > { %2479 = vmatprep.subr.mxu1 %v2558_v34 }
 0x3eb   : > { %2480 = vmatpush3.msra.mxu1 %v1401_v6 }
 0x3ec   : > { %2481 = vmatprep.subr.mxu1 %v2558_v34 }
 0x3ed   : > { %2482 = vmatpush3.msra.mxu1 %v1398_v7 }
 0x3ee   : > { %2486 = vmatprep.subr.mxu1 %v2558_v34 }
 0x423   : > { %v1356_v19 = vpop.permute.xlu1 %1355 }
 0x424   : > { %1365 = vst.msk [vmem:[#allocation4 + $0x58] sm:$0xf] %vm1268_vm10, %v1356_v19  ;;  %v1386_v26 = vpop.permute.xlu0 %1385 }
 0x425   : > { %1395 = vst.msk [vmem:[#allocation4 + $0x70] sm:$0xf] %vm1268_vm10, %v1386_v26 }
 0x427   : > { %v1327_v20 = vpop.permute.xlu1 %1326 }
 0x428   : > { %1336 = vst.msk [vmem:[#allocation4 + $0x40] sm:$0xf] %vm1268_vm10, %v1327_v20 }
 0x42b   : > { %v1371_v21 = vpop.permute.xlu1 %1370 }
 0x42c   : > { %1380 = vst.msk [vmem:[#allocation4 + $0x58] sm:$0xf0] %vm1290_vm12, %v1371_v21 }
 0x42f   : > { %v3383_v22 = vpop.permute.xlu1 %1341 }
 0x430   : > { %1350 = vst.msk [vmem:[#allocation4 + $0x40] sm:$0xf0] %vm1290_vm12, %v3383_v22 }
 0x45a   : > { %v1022_v13 = vpop.f32.mrf.mxu1 }
 0x45b   : > { %v1023_v14 = vadd.f32 %v1022_v13, %v947_v12 }
 0x45c   : > { %v2462_v16 = vpop.f32.mrf.mxu1 }
 0x45d   : > { %vm1026_vm11 = vcmp.ge.f32.partialorder %v1023_v14, 0.0  ;;  %v1027_v17 = vmul.f32 0.2, %v1023_v14 }
 0x45f   : > { %v1028_v18 = vsel %vm1026_vm11, %v1023_v14, %v1027_v17 }
 0x460   : > { %2239 = vmatmul.mubr.msk.f32.vlgmr.msra.gmra.mxu0 %vm893_vm8, %v1028_v18  ;;  %2484 = vmatmul.mubr.msk.f32.vlgmr.msra.gmra.mxu1 %vm893_vm8, %v1028_v18 }
 0x461   : > { %2514 = vmatprep.mubr.msk.f32.mxu1 %vm2565_vm1, %v2558_v34  ;;  %1855 = vmatprep.mubr.f32.mxu0 %v2558_v34  ;;  %vm1313_vm1 = vcmask 900096  }
 0x49a   : > { %v3387_v23 = vpop.f32.mrf.mxu1 }
 0x49b   : > { %1266 = vst [vmem:[#allocation4] sm:$0xf] %v3387_v23  ;;  %1381 = vrot.lane.b32.xlu1 %v3387_v23, %s2577_s20  ;;  %1351 = vrot.lane.b32.xlu0 %v3387_v23, %s2574_s17  ;;  %v3398_v25 = vrot.slane %v3387_v23, 4 }
 0x49c   : > { %v1193_v24 = vpop.f32.mrf.mxu1 }
 0x49d   : > { %1267 = vst [vmem:[#allocation4 + $0x8] sm:$0xf] %v1193_v24  ;;  %v3408_v27 = vrot.slane %v1193_v24, 4 }
 0x49f   : > { %1383 = vrot.lane.b32.xlu1 %v1193_v24, %s2577_s20  ;;  %1322 = vrot.lane.b32.xlu0 %v3387_v23, %s2575_s19 }
 0x4a3   : > { %1353 = vrot.lane.b32.xlu0 %v1193_v24, %s2574_s17  ;;  %1366 = vrot.lane.b32.xlu1 %v3398_v25, %s2576_s18 }
 0x4a7   : > { %1324 = vrot.lane.b32.xlu0 %v1193_v24, %s2575_s19  ;;  %1337 = vrot.lane.b32.xlu1 %v3398_v25, %s2570_s28 }
 0x4ab   : > { %1294 = vrot.lane.b32.xlu0 %v1193_v24, %s2563_s24 }
 0x4af   : > { %1368 = vrot.lane.b32.xlu0 %v3408_v27, %s2576_s18 }
 0x4b3   : > { %1339 = vrot.lane.b32.xlu0 %v3408_v27, %s2570_s28 }
 0x50d   : > { %v1382_v28 = vpop.permute.xlu1 %1381  ;;  %v1352_v29 = vpop.permute.xlu0 %1351 }
 0x511   : > { %v1384_v30 = vpop.permute.xlu1 %1383  ;;  %v1323_v31 = vpop.permute.xlu0 %1322 }
 0x512   : > { %v1388_v32 = vsel %vm1387_vm13, %v1382_v28, %v1384_v30  ;;  %v1389_v33 = vsel %vm1387_vm13, %v1384_v30, %v1386_v26 }
 0x513   : > { %1393 = vst [vmem:[#allocation4 + $0x60] sm:$0xf] %v1388_v32  ;;  %1394 = vst [vmem:[#allocation4 + $0x68] sm:$0xf] %v1389_v33 }
 0x515   : > { %v1354_v35 = vpop.permute.xlu0 %1353  ;;  %v1367_v42 = vpop.permute.xlu1 %1366 }
 0x516   : > { %v1358_v36 = vsel %vm1357_vm14, %v1352_v29, %v1354_v35  ;;  %v1359_v37 = vsel %vm1357_vm14, %v1354_v35, %v1356_v19 }
 0x517   : > { %1363 = vst [vmem:[#allocation4 + $0x48] sm:$0xf] %v1358_v36  ;;  %1364 = vst [vmem:[#allocation4 + $0x50] sm:$0xf] %v1359_v37 }
 0x519   : > { %v1325_v38 = vpop.permute.xlu0 %1324  ;;  %v1338_v53 = vpop.permute.xlu1 %1337 }
 0x51a   : > { %v1329_v39 = vsel %vm1328_vm15, %v1323_v31, %v1325_v38  ;;  %v1330_v40 = vsel %vm1328_vm15, %v1325_v38, %v1327_v20 }
 0x51b   : > { %1334 = vst [vmem:[#allocation4 + $0x30] sm:$0xf] %v1329_v39  ;;  %1335 = vst [vmem:[#allocation4 + $0x38] sm:$0xf] %v1330_v40 }
 0x51d   : > { %v3420_v41 = vpop.permute.xlu0 %1294 }
 0x520   : > { %v1504_v43 = vpop.f32.mrf.mxu0  ;;  %v1575_v44 = vpop.f32.mrf.mxu1 }
 0x521   : > { %v1582_v45 = vrot.slane %v1504_v43, 4  ;;  %v1584_v46 = vrot.slane %v1575_v44, 4  ;;  %v1369_v47 = vpop.permute.xlu0 %1368 }
 0x522   : > { %v1506_v48 = vpop.f32.mrf.mxu0  ;;  %v2485_v49 = vpop.f32.mrf.mxu1  ;;  %v1374_v50 = vsel %vm1372_vm0, %v1369_v47, %v1371_v21  ;;  %v1373_v51 = vsel %vm1372_vm0, %v1367_v42, %v1369_v47  ;;  %v1742_v42 = vld [vmem:[#allocation4 + $0x58] sm:$0xff] }
 0x523   : > { %1588 = vst [vmem:[#allocation4 + $0x78] ss:$-20 sps:$4 sm:$0xff] %v1582_v45   ;;  %1590 = vst.msk [vmem:[#allocation4 + $0x70] sm:$0xf0] %vm1290_vm12, %v1584_v46  ;;  %v1583_v52 = vrot.slane %v1506_v48, 4  ;;  %1713 = vrot.lane.b32.xlu1 %v1582_v45, %s2577_s20  ;;  %1717 = vrot.lane.b32.xlu0 %v1584_v46, %s2577_s20 }
 0x524   : > { %1593 = vst.msk [vmem:[#allocation4 + $0x88] sm:$0xf] %vm1268_vm10, %v1584_v46  ;;  %1379 = vst [vmem:[#allocation4 + $0x50] sm:$0xf0] %v1374_v50 }
 0x525   : > { %1378 = vst [vmem:[#allocation4 + $0x48] sm:$0xf0] %v1373_v51  ;;  %1589 = vst [vmem:[#allocation4 + $0x80] ss:$-20 sps:$4 sm:$0xff] %v1583_v52   ;;  %v1340_v54 = vpop.permute.xlu0 %1339  ;;  %v1739_v51 = vld [vmem:[#allocation4 + $0x40] sm:$0xff] }
 0x526   : > { %v1344_v55 = vsel %vm949_vm9, %v1340_v54, %v3383_v22  ;;  %v1343_v56 = vsel %vm949_vm9, %v1338_v53, %v1340_v54 }
 0x527   : > { %1700 = vrot.lane.b32.xlu1 %v1584_v46, %s2576_s18  ;;  %1696 = vrot.lane.b32.xlu0 %v1582_v45, %s2576_s18  ;;  %1349 = vst [vmem:[#allocation4 + $0x38] sm:$0xf0] %v1344_v55  ;;  %1348 = vst [vmem:[#allocation4 + $0x30] sm:$0xf0] %v1343_v56 }
 0x52a   : > { %v1745_v33 = vld [vmem:[#allocation4 + $0x70] sm:$0xff] }
 0x52b   : > { %1679 = vrot.lane.b32.xlu1 %v1582_v45, %s2574_s17  ;;  %1683 = vrot.lane.b32.xlu0 %v1584_v46, %s2574_s17 }
 0x52f   : > { %1666 = vrot.lane.b32.xlu1 %v1584_v46, %s2570_s28  ;;  %1662 = vrot.lane.b32.xlu0 %v1582_v45, %s2570_s28 }
 0x533   : > { %1645 = vrot.lane.b32.xlu1 %v1582_v45, %s2575_s19  ;;  %1649 = vrot.lane.b32.xlu0 %v1584_v46, %s2575_s19 }
 0x537   : > { %1632 = vrot.lane.b32.xlu1 %v1584_v46, %s2578_s21  ;;  %1628 = vrot.lane.b32.xlu0 %v1582_v45, %s2578_s21 }
 0x53b   : > { %1611 = vrot.lane.b32.xlu1 %v1582_v45, %s2563_s24  ;;  %1615 = vrot.lane.b32.xlu0 %v1584_v46, %s2563_s24 }
 0x53f   : > { %1598 = vrot.lane.b32.xlu1 %v1584_v46, %s2566_s29  ;;  %1594 = vrot.lane.b32.xlu0 %v1582_v45, %s2566_s29 }
 0x543   : > { %1715 = vrot.lane.b32.xlu1 %v1583_v52, %s2577_s20  ;;  %1698 = vrot.lane.b32.xlu0 %v1583_v52, %s2576_s18  ;;  %s2253_s20 = sshll.u32 %s3787_s26, 4 }
 0x544   : > { %s440_s22 = scalar_lea.vmem %s3785_s13, %s2253_s20 }
 0x547   : > { %1681 = vrot.lane.b32.xlu1 %v1583_v52, %s2574_s17  ;;  %1664 = vrot.lane.b32.xlu0 %v1583_v52, %s2570_s28 }
 0x54b   : > { %1647 = vrot.lane.b32.xlu1 %v1583_v52, %s2575_s19  ;;  %1630 = vrot.lane.b32.xlu0 %v1583_v52, %s2578_s21 }
 0x54f   : > { %1613 = vrot.lane.b32.xlu1 %v1583_v52, %s2563_s24  ;;  %1596 = vrot.lane.b32.xlu0 %v1583_v52, %s2566_s29 }
 0x553   : > { %1296 = vrot.lane.b32.xlu1 %v3358_v10, %s2563_s24  ;;  %1309 = vrot.lane.b32.xlu0 %v3408_v27, %s2578_s21 }
 0x557   : > { %1311 = vrot.lane.b32.xlu1 %v3367_v11, %s2578_s21  ;;  %1292 = vrot.lane.b32.xlu0 %v3387_v23, %s2563_s24 }
 0x55b   : > { %1307 = vrot.lane.b32.xlu1 %v3398_v25, %s2578_s21  ;;  %1278 = vrot.lane.b32.xlu0 %v3408_v27, %s2566_s29 }
 0x55f   : > { %1280 = vrot.lane.b32.xlu1 %v3367_v11, %s2566_s29  ;;  %1276 = vrot.lane.b32.xlu0 %v3398_v25, %s2566_s29 }
 0x563   : > { %1776 = vperm.xlu1 %2547, %v1773_v57  }
 0x595   : > { %v1714_v58 = vpop.permute.xlu1 %1713  ;;  %v1718_v59 = vpop.permute.xlu0 %1717 }
 0x596   : > { %1726 = vst.msk [vmem:[#allocation4 + $0x130] sm:$0xf0] %vm1290_vm12, %v1718_v59 }
 0x597   : > { %1729 = vst.msk [vmem:[#allocation4 + $0x148] sm:$0xf] %vm1268_vm10, %v1718_v59 }
 0x599   : > { %v1701_v60 = vpop.permute.xlu1 %1700  ;;  %v1697_v61 = vpop.permute.xlu0 %1696 }
 0x59a   : > { %1709 = vst.msk [vmem:[#allocation4 + $0x118] sm:$0xf0] %vm1290_vm12, %v1701_v60 }
 0x59b   : > { %1712 = vst.msk [vmem:[#allocation4 + $0x130] sm:$0xf] %vm1268_vm10, %v1701_v60 }
 0x59d   : > { %v1680_v62 = vpop.permute.xlu1 %1679  ;;  %v1684_v15 = vpop.permute.xlu0 %1683 }
 0x59e   : > { %v1772_v63 = vld [vmem:[#allocation4 + $0x148] sm:$0xf]  ;;  %1692 = vst.msk [vmem:[#allocation4 + $0x100] sm:$0xf0] %vm1290_vm12, %v1684_v15 }
 0x59f   : > { %1695 = vst.msk [vmem:[#allocation4 + $0x118] sm:$0xf] %vm1268_vm10, %v1684_v15  ;;  %2487 = vmatpush3.msk.msra.mxu1 %vm598_vm2, %v1772_v63 }
 0x5a0   : > { %2488 = vmatprep.subr.mxu1 %v2558_v34 }
 0x5a1   : > { %v1667_v0 = vpop.permute.xlu1 %1666  ;;  %v1663_v1 = vpop.permute.xlu0 %1662 }
 0x5a2   : > { %v1769_v2 = vld [vmem:[#allocation4 + $0x130] sm:$0xff]  ;;  %1675 = vst.msk [vmem:[#allocation4 + $0xe8] sm:$0xf0] %vm1290_vm12, %v1667_v0 }
 0x5a3   : > { %1678 = vst.msk [vmem:[#allocation4 + $0x100] sm:$0xf] %vm1268_vm10, %v1667_v0  ;;  %2489 = vmatpush3.msra.mxu1 %v1769_v2 }
 0x5a4   : > { %2490 = vmatprep.subr.mxu1 %v2558_v34 }
 0x5a5   : > { %v1646_v3 = vpop.permute.xlu1 %1645  ;;  %v1650_v4 = vpop.permute.xlu0 %1649 }
 0x5a6   : > { %v1766_v5 = vld [vmem:[#allocation4 + $0x118] sm:$0xff]  ;;  %1658 = vst.msk [vmem:[#allocation4 + $0xd0] sm:$0xf0] %vm1290_vm12, %v1650_v4 }
 0x5a7   : > { %1661 = vst.msk [vmem:[#allocation4 + $0xe8] sm:$0xf] %vm1268_vm10, %v1650_v4  ;;  %2491 = vmatpush3.msra.mxu1 %v1766_v5 }
 0x5a8   : > { %2492 = vmatprep.subr.mxu1 %v2558_v34 }
 0x5a9   : > { %v1633_v6 = vpop.permute.xlu1 %1632  ;;  %v1629_v7 = vpop.permute.xlu0 %1628 }
 0x5aa   : > { %v1763_v8 = vld [vmem:[#allocation4 + $0x100] sm:$0xff]  ;;  %1641 = vst.msk [vmem:[#allocation4 + $0xb8] sm:$0xf0] %vm1290_vm12, %v1633_v6 }
 0x5ab   : > { %1644 = vst.msk [vmem:[#allocation4 + $0xd0] sm:$0xf] %vm1268_vm10, %v1633_v6  ;;  %2493 = vmatpush3.msra.mxu1 %v1763_v8 }
 0x5ac   : > { %2494 = vmatprep.subr.mxu1 %v2558_v34 }
 0x5ad   : > { %v3483_v9 = vpop.permute.xlu1 %1611  ;;  %v3485_v10 = vpop.permute.xlu0 %1615 }
 0x5ae   : > { %v1760_v11 = vld [vmem:[#allocation4 + $0xe8] sm:$0xff]  ;;  %1624 = vst.msk [vmem:[#allocation4 + $0xa0] sm:$0xf0] %vm1290_vm12, %v3485_v10 }
 0x5af   : > { %1627 = vst.msk [vmem:[#allocation4 + $0xb8] sm:$0xf] %vm1268_vm10, %v3485_v10  ;;  %2495 = vmatpush3.msra.mxu1 %v1760_v11 }
 0x5b0   : > { %2496 = vmatprep.subr.mxu1 %v2558_v34 }
 0x5b1   : > { %v3492_v12 = vpop.permute.xlu1 %1598  ;;  %v3494_v13 = vpop.permute.xlu0 %1594 }
 0x5b2   : > { %v1757_v14 = vld [vmem:[#allocation4 + $0xd0] sm:$0xff]  ;;  %1607 = vst.msk [vmem:[#allocation4 + $0x88] sm:$0xf0] %vm1290_vm12, %v3492_v12 }
 0x5b3   : > { %1610 = vst.msk [vmem:[#allocation4 + $0xa0] sm:$0xf] %vm1268_vm10, %v3492_v12  ;;  %2497 = vmatpush3.msra.mxu1 %v1757_v14 }
 0x5b4   : > { %2498 = vmatprep.subr.mxu1 %v2558_v34 }
 0x5b5   : > { %v1716_v16 = vpop.permute.xlu1 %1715  ;;  %v1699_v17 = vpop.permute.xlu0 %1698 }
 0x5b6   : > { %v1754_v18 = vld [vmem:[#allocation4 + $0xb8] sm:$0xff]  ;;  %v1719_v19 = vsel %vm1387_vm13, %v1714_v58, %v1716_v16  ;;  %v1720_v20 = vsel %vm1387_vm13, %v1716_v16, %v1718_v59  ;;  %v1702_v21 = vsel %vm1372_vm0, %v1697_v61, %v1699_v17  ;;  %v1703_v22 = vsel %vm1372_vm0, %v1699_v17, %v1701_v60 }
 0x5b7   : > { %2499 = vmatpush3.msra.mxu1 %v1754_v18  ;;  %1724 = vst [vmem:[#allocation4 + $0x138] ss:$-20 sps:$4 sm:$0xff] %v1719_v19   ;;  %1725 = vst [vmem:[#allocation4 + $0x140] ss:$-20 sps:$4 sm:$0xff] %v1720_v20   ;;  %v1741_v18 = vld [vmem:[#allocation4 + $0x50] sm:$0xff]  ;;  %v1740_v19 = vld [vmem:[#allocation4 + $0x48] sm:$0xff] }
 0x5b8   : > { %1707 = vst [vmem:[#allocation4 + $0x120] ss:$-20 sps:$4 sm:$0xff] %v1702_v21   ;;  %1708 = vst [vmem:[#allocation4 + $0x128] ss:$-20 sps:$4 sm:$0xff] %v1703_v22   ;;  %2500 = vmatprep.subr.mxu1 %v2558_v34  ;;  %v1738_v20 = vld [vmem:[#allocation4 + $0x38] sm:$0xff]  ;;  %v1737_v21 = vld [vmem:[#allocation4 + $0x30] sm:$0xff] }
 0x5b9   : > { %v1682_v23 = vpop.permute.xlu1 %1681  ;;  %v1665_v24 = vpop.permute.xlu0 %1664  ;;  %v1748_v30 = vld [vmem:[#allocation4 + $0x88] sm:$0xff] }
 0x5ba   : > { %v1751_v25 = vld [vmem:[#allocation4 + $0xa0] sm:$0xff]  ;;  %v1685_v26 = vsel %vm1357_vm14, %v1680_v62, %v1682_v23  ;;  %v1686_v27 = vsel %vm1357_vm14, %v1682_v23, %v1684_v15  ;;  %v1668_v28 = vsel %vm949_vm9, %v1663_v1, %v1665_v24  ;;  %v1669_v29 = vsel %vm949_vm9, %v1665_v24, %v1667_v0  ;;  %v1730_v24 = vld [vmem:[%s3780_s8] sm:$0x3f] }
 0x5bb   : > { %2501 = vmatpush3.msra.mxu1 %v1751_v25  ;;  %1690 = vst [vmem:[#allocation4 + $0x108] ss:$-20 sps:$4 sm:$0xff] %v1685_v26   ;;  %1691 = vst [vmem:[#allocation4 + $0x110] ss:$-20 sps:$4 sm:$0xff] %v1686_v27   ;;  %v2012_v26 = vld [vmem:[%s3784_s12 + $0x238] sm:$0x3f] }
 0x5bc   : > { %1673 = vst [vmem:[#allocation4 + $0xf0] ss:$-20 sps:$4 sm:$0xff] %v1668_v28   ;;  %1674 = vst [vmem:[#allocation4 + $0xf8] ss:$-20 sps:$4 sm:$0xff] %v1669_v29   ;;  %2502 = vmatprep.subr.mxu1 %v2558_v34  ;;  %v1972_v29 = vld [vmem:[%s3784_s12 + $0xf8] sm:$0xff] }
 0x5bd   : > { %2503 = vmatpush3.msra.mxu1 %v1748_v30  ;;  %v1648_v31 = vpop.permute.xlu1 %1647  ;;  %v1631_v32 = vpop.permute.xlu0 %1630  ;;  %v1971_v30 = vld [vmem:[%s3784_s12 + $0xf0] sm:$0xff] }
 0x5be   : > { %2504 = vmatprep.subr.mxu1 %v2558_v34  ;;  %v1651_v35 = vsel %vm1328_vm15, %v1646_v3, %v1648_v31  ;;  %v1652_v36 = vsel %vm1328_vm15, %v1648_v31, %v1650_v4  ;;  %v1634_v37 = vsel %vm1313_vm1, %v1629_v7, %v1631_v32  ;;  %v1635_v38 = vsel %vm1313_vm1, %v1631_v32, %v1633_v6  ;;  %v1771_v39 = vld [vmem:[#allocation4 + $0x140] sm:$0xf]  ;;  %v1770_v40 = vld [vmem:[#allocation4 + $0x138] sm:$0xf]  ;;  %v1970_v32 = vld [vmem:[%s3784_s12 + $0xe8] sm:$0xff] }
 0x5bf   : > { %2505 = vmatpush3.msra.mxu1 %v1745_v33  ;;  %1656 = vst [vmem:[#allocation4 + $0xd8] ss:$-20 sps:$4 sm:$0xff] %v1651_v35   ;;  %1657 = vst [vmem:[#allocation4 + $0xe0] ss:$-20 sps:$4 sm:$0xff] %v1652_v36   ;;  %2242 = vmatprep.subr.msk.mxu0 %vm598_vm2, %v1771_v39  ;;  %v1768_v43 = vld [vmem:[#allocation4 + $0x128] sm:$0xff]  ;;  %v1767_v46 = vld [vmem:[#allocation4 + $0x120] sm:$0xff] }
 0x5c0   : > { %1639 = vst [vmem:[#allocation4 + $0xc0] ss:$-20 sps:$4 sm:$0xff] %v1634_v37   ;;  %1640 = vst [vmem:[#allocation4 + $0xc8] ss:$-20 sps:$4 sm:$0xff] %v1635_v38   ;;  %2506 = vmatprep.subr.mxu1 %v2558_v34  ;;  %2243 = vmatpush1.msk.msra.mxu0 %vm598_vm2, %v1770_v40  ;;  %v2011_v31 = vld [vmem:[%s3784_s12 + $0x230] sm:$0x3f] }
 0x5c1   : > { %2507 = vmatpush3.msra.mxu1 %v1742_v42  ;;  %v1614_v44 = vpop.permute.xlu1 %1613  ;;  %1797 = vmatprep.subr.mxu0 %v1768_v43  ;;  %v1597_v45 = vpop.permute.xlu0 %1596  ;;  %v1969_v33 = vld [vmem:[%s3784_s12 + $0xe0] sm:$0xff]  ;;  %v1968_v35 = vld [vmem:[%s3784_s12 + $0xd8] sm:$0xff]  ;;  %v1967_v36 = vld [vmem:[%s3784_s12 + $0xd0] sm:$0xff] }
 0x5c2   : > { %2508 = vmatprep.subr.mxu1 %v2558_v34  ;;  %v1617_v47 = vsel %vm1298_vm3, %v3483_v9, %v1614_v44  ;;  %v1618_v48 = vsel %vm1298_vm3, %v1614_v44, %v3485_v10  ;;  %v1600_v49 = vsel %vm1282_vm5, %v3494_v13, %v1597_v45  ;;  %v1601_v50 = vsel %vm1282_vm5, %v1597_v45, %v3492_v12  ;;  %v1765_v52 = vld [vmem:[#allocation4 + $0x110] sm:$0xff]  ;;  %v1764_v53 = vld [vmem:[#allocation4 + $0x108] sm:$0xff]  ;;  %v1743_v13 = vld [vmem:[#allocation4 + $0x60] sm:$0xff] }
 0x5c3   : > { %1798 = vmatpush1.msra.mxu0 %v1767_v46  ;;  %1622 = vst [vmem:[#allocation4 + $0xa8] ss:$-20 sps:$4 sm:$0xff] %v1617_v47   ;;  %1623 = vst [vmem:[#allocation4 + $0xb0] ss:$-20 sps:$4 sm:$0xff] %v1618_v48   ;;  %2509 = vmatpush3.msra.mxu1 %v1739_v51  ;;  %v1762_v54 = vld [vmem:[#allocation4 + $0xf8] sm:$0xff]  ;;  %v1761_v57 = vld [vmem:[#allocation4 + $0xf0] sm:$0xff] }
 0x5c4   : > { %1605 = vst [vmem:[#allocation4 + $0x90] ss:$-20 sps:$4 sm:$0xff] %v1600_v49   ;;  %1606 = vst [vmem:[#allocation4 + $0x98] ss:$-20 sps:$4 sm:$0xff] %v1601_v50   ;;  %1799 = vmatprep.subr.mxu0 %v1765_v52  ;;  %2510 = vmatprep.subr.mxu1 %v2558_v34  ;;  %v1966_v37 = vld [vmem:[%s3784_s12 + $0xc8] sm:$0xff]  ;;  %v1965_v38 = vld [vmem:[%s3784_s12 + $0xc0] sm:$0xff] }
 0x5c5   : > { %1800 = vmatpush1.msra.mxu0 %v1764_v53  ;;  %v1297_v55 = vpop.permute.xlu1 %1296  ;;  %v1310_v56 = vpop.permute.xlu0 %1309  ;;  %v1964_v39 = vld [vmem:[%s3784_s12 + $0xb8] sm:$0xff]  ;;  %v1962_v40 = vld [vmem:[%s3784_s12 + $0xa8] sm:$0xff]  ;;  %v1961_v42 = vld [vmem:[%s3784_s12 + $0xa0] sm:$0xff] }
 0x5c6   : > { %1801 = vmatprep.subr.mxu0 %v1762_v54  ;;  %v1300_v58 = vsel %vm1298_vm3, %v3420_v41, %v1297_v55  ;;  %1306 = vst.msk [vmem:[#allocation4 + $0x28] sm:$0xf] %vm1268_vm10, %v1297_v55  ;;  %v1759_v59 = vld [vmem:[#allocation4 + $0xe0] sm:$0xff]  ;;  %v1758_v60 = vld [vmem:[#allocation4 + $0xd8] sm:$0xff]  ;;  %v1958_v45 = vld [vmem:[%s3784_s12 + $0x88] sm:$0xff] }
 0x5c7   : > { %1802 = vmatpush1.msra.mxu0 %v1761_v57  ;;  %1305 = vst [vmem:[#allocation4 + $0x20] sm:$0xf] %v1300_v58  ;;  %v1756_v61 = vld [vmem:[#allocation4 + $0xc8] sm:$0xff]  ;;  %v1755_v63 = vld [vmem:[#allocation4 + $0xc0] sm:$0xff]  ;;  %v1959_v44 = vld [vmem:[%s3784_s12 + $0x90] sm:$0xff] }
 0x5c8   : > { %1803 = vmatprep.subr.mxu0 %v1759_v59  ;;  %v1960_v43 = vld [vmem:[%s3784_s12 + $0x98] sm:$0xff]  ;;  %v1957_v46 = vld [vmem:[%s3784_s12 + $0x80] sm:$0xff]  ;;  %v1955_v48 = vld [vmem:[%s3784_s12 + $0x70] sm:$0xff] }
 0x5c9   : > { %1804 = vmatpush1.msra.mxu0 %v1758_v60  ;;  %v1312_v62 = vpop.permute.xlu1 %1311  ;;  %v1293_v15 = vpop.permute.xlu0 %1292  ;;  %v1956_v47 = vld [vmem:[%s3784_s12 + $0x78] sm:$0xff]  ;;  %v1954_v49 = vld [vmem:[%s3784_s12 + $0x68] sm:$0xff]  ;;  %v1953_v50 = vld [vmem:[%s3784_s12 + $0x60] sm:$0xff] }
 0x5ca   : > { %1805 = vmatprep.subr.mxu0 %v1756_v61  ;;  %v1315_v0 = vsel %vm1313_vm1, %v1310_v56, %v1312_v62  ;;  %1321 = vst.msk [vmem:[#allocation4 + $0x28] sm:$0xf0] %vm1290_vm12, %v1312_v62  ;;  %v1299_v1 = vsel %vm1298_vm3, %v1293_v15, %v3420_v41  ;;  %v1753_v2 = vld [vmem:[#allocation4 + $0xb0] sm:$0xff]  ;;  %v1752_v3 = vld [vmem:[#allocation4 + $0xa8] sm:$0xff]  ;;  %v1952_v51 = vld [vmem:[%s3784_s12 + $0x58] sm:$0xff] }
 0x5cb   : > { %1806 = vmatpush1.msra.mxu0 %v1755_v63  ;;  %1320 = vst [vmem:[#allocation4 + $0x20] sm:$0xf0] %v1315_v0  ;;  %1304 = vst [vmem:[#allocation4 + $0x18] sm:$0xf] %v1299_v1  ;;  %v1750_v4 = vld [vmem:[#allocation4 + $0x98] sm:$0xff]  ;;  %v1749_v7 = vld [vmem:[#allocation4 + $0x90] sm:$0xff] }
 0x5cc   : > { %1807 = vmatprep.subr.mxu0 %v1753_v2  ;;  %v1747_v9 = vld [vmem:[#allocation4 + $0x80] sm:$0xff]  ;;  %v1746_v10 = vld [vmem:[#allocation4 + $0x78] sm:$0xff]  ;;  %v1744_v41 = vld [vmem:[#allocation4 + $0x68] sm:$0xff] }
 0x5cd   : > { %1808 = vmatpush1.msra.mxu0 %v1752_v3  ;;  %v1308_v5 = vpop.permute.xlu1 %1307  ;;  %v1279_v6 = vpop.permute.xlu0 %1278  ;;  %v1951_v52 = vld [vmem:[%s3784_s12 + $0x50] sm:$0xff]  ;;  %v1950_v53 = vld [vmem:[%s3784_s12 + $0x48] sm:$0xff]  ;;  %v1949_v54 = vld [vmem:[%s3784_s12 + $0x40] sm:$0xff] }
 0x5ce   : > { %1809 = vmatprep.subr.mxu0 %v1750_v4  ;;  %v1314_v8 = vsel %vm1313_vm1, %v1308_v5, %v1310_v56  ;;  %v1948_v55 = vld [vmem:[%s3784_s12 + $0x38] sm:$0xff]  ;;  %v1947_v56 = vld [vmem:[%s3784_s12 + $0x30] sm:$0xff]  ;;  %v1946_v57 = vld [vmem:[%s3784_s12 + $0x28] sm:$0xff] }
 0x5cf   : > { %1810 = vmatpush1.msra.mxu0 %v1749_v7  ;;  %1319 = vst [vmem:[#allocation4 + $0x18] sm:$0xf0] %v1314_v8  ;;  %v1945_v58 = vld [vmem:[%s3784_s12 + $0x20] sm:$0xff]  ;;  %v1944_v59 = vld [vmem:[%s3784_s12 + $0x18] sm:$0xff]  ;;  %v1943_v60 = vld [vmem:[%s3784_s12 + $0x10] sm:$0xff] }
 0x5d0   : > { %1811 = vmatprep.subr.mxu0 %v1747_v9  ;;  %v1942_v61 = vld [vmem:[%s3784_s12 + $0x8] sm:$0xff]  ;;  %v1941_v62 = vld [vmem:[%s3784_s12] sm:$0xff]  ;;  %v2004_v15 = vld [vmem:[%s3784_s12 + $0x1f8] sm:$0xff] }
 0x5d1   : > { %1812 = vmatpush1.msra.mxu0 %v1746_v10  ;;  %v1281_v11 = vpop.permute.xlu1 %1280  ;;  %v1277_v12 = vpop.permute.xlu0 %1276  ;;  %v1736_v14 = vld [vmem:[#allocation4 + $0x28] sm:$0xff]  ;;  %v2003_v63 = vld [vmem:[%s3784_s12 + $0x1f0] sm:$0xff]  ;;  %v2002_v0 = vld [vmem:[%s3784_s12 + $0x1e8] sm:$0xff] }
 0x5d2   : > { %1813 = vmatprep.subr.mxu0 %v1744_v41  ;;  %v1284_v16 = vsel %vm1282_vm5, %v1279_v6, %v1281_v11  ;;  %1291 = vst.msk [vmem:[#allocation4 + $0x10] sm:$0xf0] %vm1290_vm12, %v1281_v11  ;;  %v1283_v17 = vsel %vm1282_vm5, %v1277_v12, %v1279_v6  ;;  %2511 = vmatpush3.msra.mxu1 %v1736_v14  ;;  %v1735_v22 = vld [vmem:[#allocation4 + $0x20] sm:$0xff]  ;;  %v2001_v1 = vld [vmem:[%s3784_s12 + $0x1e0] sm:$0xff]  ;;  %v1999_v3 = vld [vmem:[%s3784_s12 + $0x1d0] sm:$0xff] }
 0x5d3   : > { %1814 = vmatpush1.msra.mxu0 %v1743_v13  ;;  %1289 = vst [vmem:[#allocation4 + $0x8] sm:$0xf0] %v1284_v16  ;;  %1288 = vst [vmem:[#allocation4] sm:$0xf0] %v1283_v17  ;;  %2512 = vmatprep.subr.mxu1 %v2558_v34  ;;  %v2000_v2 = vld [vmem:[%s3784_s12 + $0x1d8] sm:$0xff]  ;;  %v1998_v4 = vld [vmem:[%s3784_s12 + $0x1c8] sm:$0xff] }
 0x5d4   : > { %1815 = vmatprep.subr.mxu0 %v1741_v18  ;;  %v1997_v5 = vld [vmem:[%s3784_s12 + $0x1c0] sm:$0xff]  ;;  %v1996_v6 = vld [vmem:[%s3784_s12 + $0x1b8] sm:$0xff]  ;;  %v1995_v7 = vld [vmem:[%s3784_s12 + $0x1b0] sm:$0xff] }
 0x5d5   : > { %1816 = vmatpush1.msra.mxu0 %v1740_v19  ;;  %v1994_v8 = vld [vmem:[%s3784_s12 + $0x1a8] sm:$0xff]  ;;  %v1993_v9 = vld [vmem:[%s3784_s12 + $0x1a0] sm:$0xff]  ;;  %v1992_v10 = vld [vmem:[%s3784_s12 + $0x198] sm:$0xff] }
 0x5d6   : > { %1817 = vmatprep.subr.mxu0 %v1738_v20  ;;  %v1734_v23 = vld [vmem:[#allocation4 + $0x18] sm:$0xff]  ;;  %v1990_v11 = vld [vmem:[%s3784_s12 + $0x188] sm:$0xff]  ;;  %v1989_v12 = vld [vmem:[%s3784_s12 + $0x180] sm:$0xff] }
 0x5d7   : > { %1818 = vmatpush1.msra.mxu0 %v1737_v21  ;;  %v1991_v41 = vld [vmem:[%s3784_s12 + $0x190] sm:$0xff]  ;;  %v1988_v13 = vld [vmem:[%s3784_s12 + $0x178] sm:$0xff]  ;;  %v1986_v16 = vld [vmem:[%s3784_s12 + $0x168] sm:$0xff] }
 0x5d8   : > { %1819 = vmatprep.subr.mxu0 %v1735_v22  ;;  %v1987_v14 = vld [vmem:[%s3784_s12 + $0x170] sm:$0xff]  ;;  %v1985_v17 = vld [vmem:[%s3784_s12 + $0x160] sm:$0xff]  ;;  %v1984_v18 = vld [vmem:[%s3784_s12 + $0x158] sm:$0xff] }
 0x5d9   : > { %1820 = vmatpush1.msra.mxu0 %v1734_v23  ;;  %v1733_v25 = vld [vmem:[#allocation4 + $0x10] sm:$0xff]  ;;  %v1983_v19 = vld [vmem:[%s3784_s12 + $0x150] sm:$0xff]  ;;  %v2009_v22 = vld [vmem:[%s3784_s12 + $0x220] sm:$0xff] }
 0x5da   : > { %2513 = vmatpush3.msra.mxu1 %v1733_v25  ;;  %v1732_v27 = vld [vmem:[#allocation4 + $0x8] sm:$0xff]  ;;  %v1731_v28 = vld [vmem:[#allocation4] sm:$0xff]  ;;  %v2010_v20 = vld [vmem:[%s3784_s12 + $0x228] sm:$0xff] }
 0x5db   : > { %1821 = vmatprep.subr.mxu0 %v1732_v27  ;;  %2515 = vmatmul.mubr.msk.f32.vlgmr.msra.gmra.mxu1 %vm949_vm9, %v1730_v24  ;;  %v1982_v21 = vld [vmem:[%s3784_s12 + $0x148] sm:$0xff]  ;;  %v1981_v23 = vld [vmem:[%s3784_s12 + $0x140] sm:$0xff]  ;;  %v1980_v25 = vld [vmem:[%s3784_s12 + $0x138] sm:$0xff] }
 0x5dc   : > { %1822 = vmatpush1.msra.mxu0 %v1731_v28  ;;  %2247 = vmatprep.subr.msk.mxu1 %vm819_vm4, %v2012_v26  ;;  %v2007_v26 = vld [vmem:[%s3784_s12 + $0x210] sm:$0xff]  ;;  %v2006_v28 = vld [vmem:[%s3784_s12 + $0x208] sm:$0xff] }
 0x5dd   : > { %2244 = vmatmul.mubr.msk.f32.vlgmr.msra.gmra.mxu0 %vm949_vm9, %v1730_v24  ;;  %2023 = vmatprep.subr.mxu0 %v1972_v29  ;;  %v2008_v24 = vld [vmem:[%s3784_s12 + $0x218] sm:$0xff]  ;;  %v1979_v27 = vld [vmem:[%s3784_s12 + $0x130] sm:$0xff]  ;;  %v1978_v29 = vld [vmem:[%s3784_s12 + $0x128] sm:$0xff] }
 0x5de   : > { %2024 = vmatpush1.msra.mxu0 %v1971_v30  ;;  %2248 = vmatpush1.msk.msra.mxu1 %vm819_vm4, %v2011_v31  ;;  %v2005_v30 = vld [vmem:[%s3784_s12 + $0x200] sm:$0xff]  ;;  %vm2013_vm4 = vcmask 244736  }
 0x5df   : > { %2025 = vmatprep.subr.mxu0 %v1970_v32  ;;  %2158 = vmatprep.mubr.f32.mxu1 %v2558_v34  ;;  %v1963_v34 = vld [vmem:[%s3784_s12 + $0xb0] sm:$0xff]  ;;  %v1977_v31 = vld [vmem:[%s3784_s12 + $0x120] sm:$0xff]  ;;  %v1976_v32 = vld [vmem:[%s3784_s12 + $0x118] sm:$0xff] }
 0x5e0   : > { %2026 = vmatpush1.msra.mxu0 %v1969_v33  ;;  %2120 = vmatprep.subr.mxu1 %v2010_v20  ;;  %v1975_v33 = vld [vmem:[%s3784_s12 + $0x110] sm:$0xff] }
 0x5e1   : > { %2027 = vmatprep.subr.mxu0 %v1968_v35  ;;  %2121 = vmatpush1.msra.mxu1 %v2009_v22  ;;  %v1974_v35 = vld [vmem:[%s3784_s12 + $0x108] sm:$0xff] }
 0x5e2   : > { %2028 = vmatpush1.msra.mxu0 %v1967_v36  ;;  %2122 = vmatprep.subr.mxu1 %v2008_v24  ;;  %v1973_v36 = vld [vmem:[%s3784_s12 + $0x100] sm:$0xff] }
 0x5e3   : > { %2029 = vmatprep.subr.mxu0 %v1966_v37  ;;  %2123 = vmatpush1.msra.mxu1 %v2007_v26  ;;  %v1777_v37 = vpop.permute.xlu1 %1776 }
 0x5e4   : > { %2030 = vmatpush1.msra.mxu0 %v1965_v38  ;;  %2124 = vmatprep.subr.mxu1 %v2006_v28 }
 0x5e5   : > { %2031 = vmatprep.subr.mxu0 %v1964_v39  ;;  %2125 = vmatpush1.msra.mxu1 %v2005_v30 }
 0x5e6   : > { %2032 = vmatpush1.msra.mxu0 %v1963_v34 }
 0x5e7   : > { %2033 = vmatprep.subr.mxu0 %v1962_v40 }
 0x5e8   : > { %2034 = vmatpush1.msra.mxu0 %v1961_v42 }
 0x5e9   : > { %2035 = vmatprep.subr.mxu0 %v1960_v43 }
 0x5ea   : > { %2036 = vmatpush1.msra.mxu0 %v1959_v44 }
 0x5eb   : > { %2037 = vmatprep.subr.mxu0 %v1958_v45 }
 0x5ec   : > { %2038 = vmatpush1.msra.mxu0 %v1957_v46 }
 0x5ed   : > { %2039 = vmatprep.subr.mxu0 %v1956_v47 }
 0x5ee   : > { %2040 = vmatpush1.msra.mxu0 %v1955_v48 }
 0x5ef   : > { %2041 = vmatprep.subr.mxu0 %v1954_v49 }
 0x5f0   : > { %2042 = vmatpush1.msra.mxu0 %v1953_v50 }
 0x5f1   : > { %2043 = vmatprep.subr.mxu0 %v1952_v51 }
 0x5f2   : > { %2044 = vmatpush1.msra.mxu0 %v1951_v52 }
 0x5f3   : > { %2045 = vmatprep.subr.mxu0 %v1950_v53 }
 0x5f4   : > { %2046 = vmatpush1.msra.mxu0 %v1949_v54 }
 0x5f5   : > { %2047 = vmatprep.subr.mxu0 %v1948_v55 }
 0x5f6   : > { %2048 = vmatpush1.msra.mxu0 %v1947_v56 }
 0x5f7   : > { %2049 = vmatprep.subr.mxu0 %v1946_v57 }
 0x5f8   : > { %2050 = vmatpush1.msra.mxu0 %v1945_v58 }
 0x5f9   : > { %2051 = vmatprep.subr.mxu0 %v1944_v59 }
 0x5fa   : > { %2052 = vmatpush1.msra.mxu0 %v1943_v60 }
 0x5fb   : > { %2053 = vmatprep.subr.mxu0 %v1942_v61 }
 0x5fc   : > { %2054 = vmatpush1.msra.mxu0 %v1941_v62 }
 0x5fd   : > { %2055 = vmatprep.subr.mxu0 %v2004_v15 }
 0x5fe   : > { %2056 = vmatpush2.msra.mxu0 %v2003_v63 }
 0x5ff   : > { %2057 = vmatprep.subr.mxu0 %v2002_v0 }
 0x600   : > { %2058 = vmatpush2.msra.mxu0 %v2001_v1 }
 0x601   : > { %2059 = vmatprep.subr.mxu0 %v2000_v2 }
 0x602   : > { %2060 = vmatpush2.msra.mxu0 %v1999_v3 }
 0x603   : > { %2061 = vmatprep.subr.mxu0 %v1998_v4 }
 0x604   : > { %2062 = vmatpush2.msra.mxu0 %v1997_v5 }
 0x605   : > { %2063 = vmatprep.subr.mxu0 %v1996_v6 }
 0x606   : > { %2064 = vmatpush2.msra.mxu0 %v1995_v7 }
 0x607   : > { %2065 = vmatprep.subr.mxu0 %v1994_v8 }
 0x608   : > { %2066 = vmatpush2.msra.mxu0 %v1993_v9 }
 0x609   : > { %2067 = vmatprep.subr.mxu0 %v1992_v10 }
 0x60a   : > { %2068 = vmatpush2.msra.mxu0 %v1991_v41 }
 0x60b   : > { %2069 = vmatprep.subr.mxu0 %v1990_v11 }
 0x60c   : > { %2070 = vmatpush2.msra.mxu0 %v1989_v12 }
 0x60d   : > { %2071 = vmatprep.subr.mxu0 %v1988_v13 }
 0x60e   : > { %2072 = vmatpush2.msra.mxu0 %v1987_v14 }
 0x60f   : > { %2073 = vmatprep.subr.mxu0 %v1986_v16 }
 0x610   : > { %2074 = vmatpush2.msra.mxu0 %v1985_v17 }
 0x611   : > { %2075 = vmatprep.subr.mxu0 %v1984_v18 }
 0x612   : > { %2076 = vmatpush2.msra.mxu0 %v1983_v19 }
 0x613   : > { %2077 = vmatprep.subr.mxu0 %v1982_v21 }
 0x614   : > { %2078 = vmatpush2.msra.mxu0 %v1981_v23 }
 0x615   : > { %2079 = vmatprep.subr.mxu0 %v1980_v25 }
 0x616   : > { %2080 = vmatpush2.msra.mxu0 %v1979_v27 }
 0x617   : > { %2081 = vmatprep.subr.mxu0 %v1978_v29 }
 0x618   : > { %2082 = vmatpush2.msra.mxu0 %v1977_v31 }
 0x619   : > { %2083 = vmatprep.subr.mxu0 %v1976_v32 }
 0x61a   : > { %2084 = vmatpush2.msra.mxu0 %v1975_v33 }
 0x61b   : > { %2085 = vmatprep.subr.mxu0 %v1974_v35 }
 0x61c   : > { %2086 = vmatpush2.msra.mxu0 %v1973_v36 }
 0x69b   : > { %v1928_v38 = vpop.f32.mrf.mxu1 }
 0x69c   : > { %v1929_v39 = vadd.f32 %v1928_v38, %v1777_v37 }
 0x69d   : > { %v1857_v34 = vpop.f32.mrf.mxu0  ;;  %v2516_v40 = vpop.f32.mrf.mxu1 }
 0x69e   : > { %vm1934_vm2 = vcmp.ge.f32.partialorder %v1929_v39, 0.0  ;;  %v1937_v42 = vmul.f32 0.2, %v1929_v39  ;;  %v1858_v43 = vadd.f32 %v1857_v34, %v1777_v37 }
 0x69f   : > { %v1859_v44 = vpop.f32.mrf.mxu0 }
 0x6a0   : > { %v1940_v45 = vsel %vm1934_vm2, %v1929_v39, %v1937_v42  ;;  %v1860_v46 = vadd.f32 %v1859_v44, %v1777_v37  ;;  %v1935_v47 = vmul.f32 0.2, %v1858_v43  ;;  %vm1932_vm6 = vcmp.ge.f32.partialorder %v1858_v43, 0.0 }
 0x6a1   : > { %2249 = vmatmul.mubr.msk.f32.vlgmr.msra.gmra.mxu1 %vm2013_vm4, %v1940_v45 }
 0x6a2   : > { %v1936_v48 = vmul.f32 0.2, %v1860_v46  ;;  %vm1933_vm7 = vcmp.ge.f32.partialorder %v1860_v46, 0.0  ;;  %v1938_v50 = vsel %vm1932_vm6, %v1858_v43, %v1935_v47 }
 0x6a4   : > { %v1939_v49 = vsel %vm1933_vm7, %v1860_v46, %v1936_v48 }
 0x6a5   : > { %2087 = vmatprep.mubr.f32.mxu0 %v1939_v49 }
 0x6a6   : > { %2088 = vmatmul.mubr.f32.vlgmr.msra.gmra.mxu0 %v1938_v50 }
 0x761   : > { %v2160_v51 = vpop.f32.mrf.mxu1 }
 0x763   : > { %v2162_v54 = vpop.f32.mrf.mxu1 }
 0x766   : > { %v2089_v52 = vpop.f32.mrf.mxu0 }
 0x767   : > { %v2161_v53 = vadd.f32 %v2160_v51, %v2089_v52 }
 0x768   : > { %v2091_v55 = vpop.f32.mrf.mxu0 }
 0x769   : > { %2165 = vst [vmem:[%s440_s22] sm:$0x3f] %v2161_v53  ;;  %v2163_v56 = vadd.f32 %v2162_v54, %v2091_v55 }
 0x76b   : > { %2166 = vst [vmem:[%s440_s22 + $0x8] sm:$0x3f] %v2163_v56 }
 0x76c PF: > { %s23_s25 = sadd.s32 1, %s2556_s25  }
 0x76d   : > { %p20_p4 = scmp.ge.s32.totalorder %s23_s25, 4  }
 0x76f   :  { %22 = sbr.rel (!%p20_p4) target bundleno = 1 (0x1), region = 102 }

</bundles_post_ra>
